<compile_context>
chip_gen: v7x
topology: tpu7x:2x2x1
jax: 0.10.0
libtpu: 0.0.40
codegen_flags: <defaults>
</compile_context>

<pallas_src>
import functools

import jax
import jax.numpy as jnp
from jax.experimental import pallas as pl
from jax.experimental.pallas import tpu as pltpu

EPS = 1e-5
_LANE = 128


def _round_up(x, m):
    return (x + m - 1) // m * m


def _device_kind():
    try:
        return jax.devices()[0].device_kind.lower()
    except Exception:
        return ""


_KIND = _device_kind()
_IS_V5E = ("v5 lite" in _KIND) or ("v5e" in _KIND) or ("v5litepod" in _KIND)
_IS_V6 = "v6" in _KIND
_IS_V7 = "v7" in _KIND

# Generation-aware scoped-VMEM cap: leave headroom on v7x (64 MiB physical),
# use the larger budget on v5e/v6e (128 MiB physical), conservative otherwise.
if _IS_V7:
    _VMEM_LIMIT = 56 * 1024 * 1024
elif _IS_V5E or _IS_V6:
    _VMEM_LIMIT = 100 * 1024 * 1024
else:
    _VMEM_LIMIT = 64 * 1024 * 1024

# bf16 VPU math for the fused BN1 affine only where the VPU supports bf16.
_BN_FUSE_DTYPE = jnp.bfloat16 if (_IS_V6 or _IS_V7) else jnp.float32


# ------------------------------ Pallas kernels -------------------------------

def _conv3x3_kernel(*refs, fuse_prev: bool):
    """3x3 conv (padding=1) over one *unpadded* NHWC image resident in VMEM.

    refs (fuse_prev=False): x_ref (H,W,Cin) bf16, w_ref (9,Cin,Cout) bf16,
                            y_ref (H,W,Cout) or (H*W,Cout), stats_ref (2,Cout)
    refs (fuse_prev=True):  x_ref, w_ref, sc_ref (1,Cin), sh_ref (1,Cin),
                            y_ref, stats_ref
    """
    if fuse_prev:
        x_ref, w_ref, sc_ref, sh_ref, y_ref, stats_ref = refs
    else:
        x_ref, w_ref, y_ref, stats_ref = refs

    h, w, cin = x_ref.shape
    cout = w_ref.shape[-1]

    a = x_ref[...]
    if fuse_prev:
        # a1 = ReLU(BN1(y1)) applied on the fly to the unpadded image; the halo
        # appended below is true zeros, so no re-masking is needed.
        ct = sc_ref.dtype                      # bf16 on v6e/v7x, f32 on v5e
        a = jnp.maximum(a.astype(ct) * sc_ref[...].reshape(1, 1, cin)
                        + sh_ref[...].reshape(1, 1, cin), 0)
        a = a.astype(jnp.bfloat16)

    # Build the zero spatial halo in-kernel; pad the width so the padded
    # sublane extent is a multiple of 8 (no masked ops on the shifted views).
    w_al = _round_up(w + 2, 8)
    zl = jnp.zeros((h, 1, cin), jnp.bfloat16)
    zr = jnp.zeros((h, w_al - w - 1, cin), jnp.bfloat16)
    ap = jnp.concatenate([zl, a, zr], axis=1)          # (h, w_al, cin)
    zt = jnp.zeros((1, w_al, cin), jnp.bfloat16)
    ap = jnp.concatenate([zt, ap, zt], axis=0)         # (h+2, w_al, cin)

    # In-kernel im2col: the sublane (dw) shift is hoisted out of the tap loop
    # (3 shifted copies, not 9); dh shifts are layout-free row slices.
    acc = jnp.zeros((h * w, cout), jnp.float32)
    for dw in range(3):
        a_dw = ap[:, dw:dw + w, :]                      # (h+2, w, cin)
        for dh in range(3):
            patch = a_dw[dh:dh + h, :, :].reshape(h * w, cin)
            acc = acc + jnp.dot(patch, w_ref[dh * 3 + dw],
                                preferred_element_type=jnp.float32)

    # Per-image partial BN statistics (reduced across the batch in the wrapper).
    stats_ref[...] = jnp.concatenate(
        [jnp.sum(acc, axis=0, keepdims=True),
         jnp.sum(acc * acc, axis=0, keepdims=True)], axis=0)

    # Single dense, lane/sublane-aligned store of the raw conv output (bf16).
    y_ref[...] = acc.reshape(y_ref.shape).astype(y_ref.dtype)


def _bn_relu_skip_kernel(y_ref, src_ref, wsk_ref, sc_ref, sh_ref, b_ref, o_ref):
    # out = ReLU( ReLU(BN2(y2)) + src @ Wskip + b_skip )
    a = jnp.maximum(y_ref[...].astype(jnp.float32) * sc_ref[...] + sh_ref[...],
                    0.0)
    ident = jnp.dot(src_ref[...], wsk_ref[...],
                    preferred_element_type=jnp.float32) + b_ref[...]
    o_ref[...] = jnp.maximum(a + ident, 0.0)


# ------------------------------ Pallas wrappers -------------------------------

def pallas_conv3x3(x, wmat, *, prev_scale=None, prev_shift=None,
                   flat_output=False, out_dtype=jnp.bfloat16):
    n, h, w, cin = x.shape
    cout = wmat.shape[-1]
    fuse_prev = prev_scale is not None

    kern = functools.partial(_conv3x3_kernel, fuse_prev=fuse_prev)

    in_specs = [pl.BlockSpec((None, h, w, cin), lambda i: (i, 0, 0, 0)),
                pl.BlockSpec((9, cin, cout), lambda i: (0, 0, 0))]
    args = [x, wmat]
    if fuse_prev:
        in_specs += [pl.BlockSpec((1, cin), lambda i: (0, 0)),
                     pl.BlockSpec((1, cin), lambda i: (0, 0))]
        args += [prev_scale, prev_shift]

    if flat_output:
        y_shape = jax.ShapeDtypeStruct((n * h * w, cout), out_dtype)
        y_spec = pl.BlockSpec((h * w, cout), lambda i: (i, 0))
    else:
        y_shape = jax.ShapeDtypeStruct((n, h, w, cout), out_dtype)
        y_spec = pl.BlockSpec((None, h, w, cout), lambda i: (i, 0, 0, 0))

    stats_shape = jax.ShapeDtypeStruct((n, 2, cout), jnp.float32)
    stats_spec = pl.BlockSpec((None, 2, cout), lambda i: (i, 0, 0))

    return pl.pallas_call(
        kern,
        out_shape=(y_shape, stats_shape),
        grid_spec=pltpu.PrefetchScalarGridSpec(
            num_scalar_prefetch=0,
            grid=(n,),
            in_specs=in_specs,
            out_specs=(y_spec, stats_spec)),
        compiler_params=pltpu.CompilerParams(
            dimension_semantics=("parallel",),
            vmem_limit_bytes=_VMEM_LIMIT),
    )(*args)


def pallas_bn_relu_skip(y2, src_flat, wskip, scale, shift, bskip):
    m, cout = y2.shape
    cin = src_flat.shape[1]
    tm = min(2048, m)                    # large row-dense tiles; pure HBM roofline
    return pl.pallas_call(
        _bn_relu_skip_kernel,
        out_shape=jax.ShapeDtypeStruct((m, cout), jnp.float32),
        grid_spec=pltpu.PrefetchScalarGridSpec(
            num_scalar_prefetch=0,
            grid=(pl.cdiv(m, tm),),
            in_specs=[pl.BlockSpec((tm, cout), lambda i: (i, 0)),
                      pl.BlockSpec((tm, cin), lambda i: (i, 0)),
                      pl.BlockSpec((cin, cout), lambda i: (0, 0)),
                      pl.BlockSpec((1, cout), lambda i: (0, 0)),
                      pl.BlockSpec((1, cout), lambda i: (0, 0)),
                      pl.BlockSpec((1, cout), lambda i: (0, 0))],
            out_specs=pl.BlockSpec((tm, cout), lambda i: (i, 0))),
        compiler_params=pltpu.CompilerParams(
            dimension_semantics=("parallel",),
            vmem_limit_bytes=_VMEM_LIMIT),
    )(y2, src_flat, wskip, scale, shift, bskip)


# --------------------------------- JAX glue -----------------------------------

def _w3x3_to_mat(w_oihw, cin_p, cout_p):
    # (Cout, Cin, 3, 3) -> (9, Cin_p, Cout_p) bf16, k = dh*3 + dw
    cout, cin, kh, kw = w_oihw.shape
    wm = jnp.transpose(w_oihw, (2, 3, 1, 0)).reshape(kh * kw, cin, cout)
    wm = jnp.pad(wm, ((0, 0), (0, cin_p - cin), (0, cout_p - cout)))
    return wm.astype(jnp.bfloat16)


def _bn_scale_shift(stats, count, gamma, beta, c_pad, dtype=jnp.float32):
    s = jnp.sum(stats, axis=0)                           # (2, Cp)
    gamma_p = jnp.pad(gamma.astype(jnp.float32), (0, c_pad - gamma.shape[0]))
    beta_p = jnp.pad(beta.astype(jnp.float32), (0, c_pad - beta.shape[0]))
    mean = s[0] / count
    var = jnp.maximum(s[1] / count - mean * mean, 0.0)   # clamp cancellation
    scale = gamma_p / jnp.sqrt(var + EPS)
    shift = beta_p - mean * scale
    return scale[None, :].astype(dtype), shift[None, :].astype(dtype)


def bottleneck_forward(src_nchw, params):
    n, cin, h, w = src_nchw.shape
    m = n * h * w
    cmid = params["w1"].shape[0]
    cout = params["w2"].shape[0]
    cin_p, cmid_p, cout_p = (_round_up(c, _LANE) for c in (cin, cmid, cout))

    # NCHW -> NHWC + channel pad to lane-dense multiples of 128, bf16 for MXU.
    # The same unpadded buffer feeds conv1 and the 1x1 skip conv; the spatial
    # halo is built inside the conv kernels (no padded copy through HBM).
    # TODO(synk): keep NHWC end-to-end in the surrounding model to drop the two
    # layout transposes (each is an extra HBM pass done by XLA).
    src_nhwc = jnp.transpose(src_nchw, (0, 2, 3, 1))
    src_bf = jnp.pad(src_nhwc,
                     ((0, 0), (0, 0), (0, 0), (0, cin_p - cin))).astype(jnp.bfloat16)
    src_flat = src_bf.reshape(m, cin_p)

    w1m = _w3x3_to_mat(params["w1"], cin_p, cmid_p)
    w2m = _w3x3_to_mat(params["w2"], cmid_p, cout_p)
    wskip = jnp.pad(params["wskip"].reshape(cout, cin).T,
                    ((0, cin_p - cin), (0, cout_p - cout))).astype(jnp.bfloat16)
    bskip = jnp.pad(params["bskip"], (0, cout_p - cout)).astype(jnp.float32)[None, :]

    # ConvBlock 1: raw conv (bf16 output) + fused per-image BN statistics.
    y1, stats1 = pallas_conv3x3(src_bf, w1m, flat_output=False)
    sc1, sh1 = _bn_scale_shift(stats1, m, params["g1"], params["b1"], cmid_p,
                               dtype=_BN_FUSE_DTYPE)

    # ConvBlock 2: BN1+ReLU applied on the fly, flat bf16 output + fused stats.
    y2, stats2 = pallas_conv3x3(y1, w2m, prev_scale=sc1, prev_shift=sh1,
                                flat_output=True)
    sc2, sh2 = _bn_scale_shift(stats2, m, params["g2"], params["b2"], cout_p)

    # BN2 + ReLU + 1x1 skip conv (+bias) + residual add + final ReLU, fused.
    out_flat = pallas_bn_relu_skip(y2, src_flat, wskip, sc2, sh2, bskip)

    out_nhwc = out_flat.reshape(n, h, w, cout_p)[..., :cout]
    return jnp.transpose(out_nhwc, (0, 3, 1, 2))                 # back to NCHW


# -------------------------------- reference -----------------------------------

def bottleneck_reference(src, params):
    def conv(x, wt, pad):
        return jax.lax.conv_general_dilated(
            x, wt, window_strides=(1, 1), padding=((pad, pad), (pad, pad)),
            dimension_numbers=("NCHW", "OIHW", "NCHW"))

    def bn(x, gamma, beta):
        mean = x.mean(axis=(0, 2, 3), keepdims=True)
        var = x.var(axis=(0, 2, 3), keepdims=True)
        xn = (x - mean) / jnp.sqrt(var + EPS)
        return xn * gamma[None, :, None, None] + beta[None, :, None, None]

    f = jax.nn.relu(bn(conv(src, params["w1"], 1), params["g1"], params["b1"]))
    f = jax.nn.relu(bn(conv(f, params["w2"], 1), params["g2"], params["b2"]))
    ident = conv(src, params["wskip"], 0) + params["bskip"][None, :, None, None]
    return jax.nn.relu(f + ident)


# ----------------------------------- main --------------------------------------

if __name__ == "__main__":
    key = jax.random.PRNGKey(0)
    N, Cin, Cinter, Cout, H, W = 2, 4, 8, 8, 16, 16
    keys = jax.random.split(key, 8)

    src = jax.random.normal(keys[0], (N, Cin, H, W), jnp.float32)
    params = dict(
        w1=0.2 * jax.random.normal(keys[1], (Cinter, Cin, 3, 3), jnp.float32),
        g1=1.0 + 0.05 * jnp.arange(Cinter, dtype=jnp.float32),
        b1=0.01 * jnp.arange(Cinter, dtype=jnp.float32),
        w2=0.2 * jax.random.normal(keys[2], (Cout, Cinter, 3, 3), jnp.float32),
        g2=1.0 - 0.03 * jnp.arange(Cout, dtype=jnp.float32),
        b2=-0.02 * jnp.arange(Cout, dtype=jnp.float32),
        wskip=0.2 * jax.random.normal(keys[3], (Cout, Cin, 1, 1), jnp.float32),
        bskip=0.1 * jax.random.normal(keys[4], (Cout,), jnp.float32),
    )

    out = jax.block_until_ready(bottleneck_forward(src, params))
    ref = jax.block_until_ready(bottleneck_reference(src, params))

    assert out.shape == (N, Cout, H, W), out.shape
    # bf16 MXU inputs + bf16 stored intermediates (f32 accumulation) -> relaxed
    # tolerance vs the f32 reference.
    max_err = float(jnp.max(jnp.abs(out - ref)))
    assert jnp.allclose(out, ref, atol=4e-2, rtol=4e-2), max_err
    print("KERNEL_OK")
</pallas_src>

<mosaic_0001>
module attributes {stable_mosaic.version = 11 : i64} {
  func.func @_conv3x3_kernel(%arg0: i32, %arg1: memref<1x16x16x128xbf16, #tpu.memory_space<vmem>>, %arg2: memref<9x128x128xbf16, #tpu.memory_space<vmem>>, %arg3: memref<1x16x16x128xbf16, #tpu.memory_space<vmem>>, %arg4: memref<1x2x128xf32, #tpu.memory_space<vmem>>) attributes {dimension_semantics = [#tpu.dimension_semantics<parallel>], iteration_bounds = array<i64: 2>, scalar_prefetch = 0 : i64, scratch_operands = 0 : i64, tpu.core_type = #tpu.core_type<tc>, window_params = [{transform_indices = @transform_0, window_bounds = array<i64: 1, 16, 16, 128>}, {pipeline_mode = #tpu.pipeline_mode<synchronous>, transform_indices = @transform_1, window_bounds = array<i64: 9, 128, 128>}, {transform_indices = @transform_2, window_bounds = array<i64: 1, 16, 16, 128>}, {transform_indices = @transform_3, window_bounds = array<i64: 1, 2, 128>}]} {
    %c0 = arith.constant 0 : index
    %c0_0 = arith.constant 0 : index
    %c0_1 = arith.constant 0 : index
    %c0_2 = arith.constant 0 : index
    %0 = vector.load %arg1[%c0, %c0_0, %c0_1, %c0_2] : memref<1x16x16x128xbf16, #tpu.memory_space<vmem>>, vector<1x16x16x128xbf16>
    %1 = vector.shape_cast %0 : vector<1x16x16x128xbf16> to vector<16x16x128xbf16>
    %cst = arith.constant 0.000000e+00 : bf16
    %2 = vector.broadcast %cst : bf16 to vector<16x1x128xbf16>
    %cst_3 = arith.constant 0.000000e+00 : bf16
    %3 = vector.broadcast %cst_3 : bf16 to vector<16x7x128xbf16>
    %4 = tpu.concatenate %2, %1, %3 in 1 : vector<16x1x128xbf16>, vector<16x16x128xbf16>, vector<16x7x128xbf16> -> vector<16x24x128xbf16>
    %cst_4 = arith.constant 0.000000e+00 : bf16
    %5 = vector.broadcast %cst_4 : bf16 to vector<1x24x128xbf16>
    %6 = tpu.concatenate %5, %4, %5 in 0 : vector<1x24x128xbf16>, vector<16x24x128xbf16>, vector<1x24x128xbf16> -> vector<18x24x128xbf16>
    %cst_5 = arith.constant 0.000000e+00 : f32
    %7 = vector.broadcast %cst_5 : f32 to vector<256x128xf32>
    %8 = vector.extract_strided_slice %6 {offsets = [0, 0, 0], sizes = [18, 16, 128], strides = [1, 1, 1]} : vector<18x24x128xbf16> to vector<18x16x128xbf16>
    %9 = vector.extract_strided_slice %8 {offsets = [0, 0, 0], sizes = [16, 16, 128], strides = [1, 1, 1]} : vector<18x16x128xbf16> to vector<16x16x128xbf16>
    %10 = vector.shape_cast %9 : vector<16x16x128xbf16> to vector<256x128xbf16>
    %c0_6 = arith.constant 0 : index
    %c0_7 = arith.constant 0 : index
    %c0_8 = arith.constant 0 : index
    %11 = vector.load %arg2[%c0_6, %c0_7, %c0_8] : memref<9x128x128xbf16, #tpu.memory_space<vmem>>, vector<1x128x128xbf16>
    %12 = vector.shape_cast %11 : vector<1x128x128xbf16> to vector<128x128xbf16>
    %cst_9 = arith.constant dense<0.000000e+00> : vector<256x128xf32>
    %13 = tpu.matmul %10, %12, %cst_9 {dimension_numbers = #tpu.dot_dimension_numbers<[1], [0], [0], [1], [0, 0, 1, 1], [], []>} : vector<256x128xbf16>, vector<128x128xbf16>, vector<256x128xf32> -> vector<256x128xf32>
    %14 = arith.addf %7, %13 : vector<256x128xf32>
    %15 = vector.extract_strided_slice %8 {offsets = [1, 0, 0], sizes = [16, 16, 128], strides = [1, 1, 1]} : vector<18x16x128xbf16> to vector<16x16x128xbf16>
    %16 = vector.shape_cast %15 : vector<16x16x128xbf16> to vector<256x128xbf16>
    %c3 = arith.constant 3 : index
    %c0_10 = arith.constant 0 : index
    %c0_11 = arith.constant 0 : index
    %17 = vector.load %arg2[%c3, %c0_10, %c0_11] : memref<9x128x128xbf16, #tpu.memory_space<vmem>>, vector<1x128x128xbf16>
    %18 = vector.shape_cast %17 : vector<1x128x128xbf16> to vector<128x128xbf16>
    %cst_12 = arith.constant dense<0.000000e+00> : vector<256x128xf32>
    %19 = tpu.matmul %16, %18, %cst_12 {dimension_numbers = #tpu.dot_dimension_numbers<[1], [0], [0], [1], [0, 0, 1, 1], [], []>} : vector<256x128xbf16>, vector<128x128xbf16>, vector<256x128xf32> -> vector<256x128xf32>
    %20 = arith.addf %14, %19 : vector<256x128xf32>
    %21 = vector.extract_strided_slice %8 {offsets = [2, 0, 0], sizes = [16, 16, 128], strides = [1, 1, 1]} : vector<18x16x128xbf16> to vector<16x16x128xbf16>
    %22 = vector.shape_cast %21 : vector<16x16x128xbf16> to vector<256x128xbf16>
    %c6 = arith.constant 6 : index
    %c0_13 = arith.constant 0 : index
    %c0_14 = arith.constant 0 : index
    %23 = vector.load %arg2[%c6, %c0_13, %c0_14] : memref<9x128x128xbf16, #tpu.memory_space<vmem>>, vector<1x128x128xbf16>
    %24 = vector.shape_cast %23 : vector<1x128x128xbf16> to vector<128x128xbf16>
    %cst_15 = arith.constant dense<0.000000e+00> : vector<256x128xf32>
    %25 = tpu.matmul %22, %24, %cst_15 {dimension_numbers = #tpu.dot_dimension_numbers<[1], [0], [0], [1], [0, 0, 1, 1], [], []>} : vector<256x128xbf16>, vector<128x128xbf16>, vector<256x128xf32> -> vector<256x128xf32>
    %26 = arith.addf %20, %25 : vector<256x128xf32>
    %27 = vector.extract_strided_slice %6 {offsets = [0, 1, 0], sizes = [18, 16, 128], strides = [1, 1, 1]} : vector<18x24x128xbf16> to vector<18x16x128xbf16>
    %28 = vector.extract_strided_slice %27 {offsets = [0, 0, 0], sizes = [16, 16, 128], strides = [1, 1, 1]} : vector<18x16x128xbf16> to vector<16x16x128xbf16>
    %29 = vector.shape_cast %28 : vector<16x16x128xbf16> to vector<256x128xbf16>
    %c1 = arith.constant 1 : index
    %c0_16 = arith.constant 0 : index
    %c0_17 = arith.constant 0 : index
    %30 = vector.load %arg2[%c1, %c0_16, %c0_17] : memref<9x128x128xbf16, #tpu.memory_space<vmem>>, vector<1x128x128xbf16>
    %31 = vector.shape_cast %30 : vector<1x128x128xbf16> to vector<128x128xbf16>
    %cst_18 = arith.constant dense<0.000000e+00> : vector<256x128xf32>
    %32 = tpu.matmul %29, %31, %cst_18 {dimension_numbers = #tpu.dot_dimension_numbers<[1], [0], [0], [1], [0, 0, 1, 1], [], []>} : vector<256x128xbf16>, vector<128x128xbf16>, vector<256x128xf32> -> vector<256x128xf32>
    %33 = arith.addf %26, %32 : vector<256x128xf32>
    %34 = vector.extract_strided_slice %27 {offsets = [1, 0, 0], sizes = [16, 16, 128], strides = [1, 1, 1]} : vector<18x16x128xbf16> to vector<16x16x128xbf16>
    %35 = vector.shape_cast %34 : vector<16x16x128xbf16> to vector<256x128xbf16>
    %c4 = arith.constant 4 : index
    %c0_19 = arith.constant 0 : index
    %c0_20 = arith.constant 0 : index
    %36 = vector.load %arg2[%c4, %c0_19, %c0_20] : memref<9x128x128xbf16, #tpu.memory_space<vmem>>, vector<1x128x128xbf16>
    %37 = vector.shape_cast %36 : vector<1x128x128xbf16> to vector<128x128xbf16>
    %cst_21 = arith.constant dense<0.000000e+00> : vector<256x128xf32>
    %38 = tpu.matmul %35, %37, %cst_21 {dimension_numbers = #tpu.dot_dimension_numbers<[1], [0], [0], [1], [0, 0, 1, 1], [], []>} : vector<256x128xbf16>, vector<128x128xbf16>, vector<256x128xf32> -> vector<256x128xf32>
    %39 = arith.addf %33, %38 : vector<256x128xf32>
    %40 = vector.extract_strided_slice %27 {offsets = [2, 0, 0], sizes = [16, 16, 128], strides = [1, 1, 1]} : vector<18x16x128xbf16> to vector<16x16x128xbf16>
    %41 = vector.shape_cast %40 : vector<16x16x128xbf16> to vector<256x128xbf16>
    %c7 = arith.constant 7 : index
    %c0_22 = arith.constant 0 : index
    %c0_23 = arith.constant 0 : index
    %42 = vector.load %arg2[%c7, %c0_22, %c0_23] : memref<9x128x128xbf16, #tpu.memory_space<vmem>>, vector<1x128x128xbf16>
    %43 = vector.shape_cast %42 : vector<1x128x128xbf16> to vector<128x128xbf16>
    %cst_24 = arith.constant dense<0.000000e+00> : vector<256x128xf32>
    %44 = tpu.matmul %41, %43, %cst_24 {dimension_numbers = #tpu.dot_dimension_numbers<[1], [0], [0], [1], [0, 0, 1, 1], [], []>} : vector<256x128xbf16>, vector<128x128xbf16>, vector<256x128xf32> -> vector<256x128xf32>
    %45 = arith.addf %39, %44 : vector<256x128xf32>
    %46 = vector.extract_strided_slice %6 {offsets = [0, 2, 0], sizes = [18, 16, 128], strides = [1, 1, 1]} : vector<18x24x128xbf16> to vector<18x16x128xbf16>
    %47 = vector.extract_strided_slice %46 {offsets = [0, 0, 0], sizes = [16, 16, 128], strides = [1, 1, 1]} : vector<18x16x128xbf16> to vector<16x16x128xbf16>
    %48 = vector.shape_cast %47 : vector<16x16x128xbf16> to vector<256x128xbf16>
    %c2 = arith.constant 2 : index
    %c0_25 = arith.constant 0 : index
    %c0_26 = arith.constant 0 : index
    %49 = vector.load %arg2[%c2, %c0_25, %c0_26] : memref<9x128x128xbf16, #tpu.memory_space<vmem>>, vector<1x128x128xbf16>
    %50 = vector.shape_cast %49 : vector<1x128x128xbf16> to vector<128x128xbf16>
    %cst_27 = arith.constant dense<0.000000e+00> : vector<256x128xf32>
    %51 = tpu.matmul %48, %50, %cst_27 {dimension_numbers = #tpu.dot_dimension_numbers<[1], [0], [0], [1], [0, 0, 1, 1], [], []>} : vector<256x128xbf16>, vector<128x128xbf16>, vector<256x128xf32> -> vector<256x128xf32>
    %52 = arith.addf %45, %51 : vector<256x128xf32>
    %53 = vector.extract_strided_slice %46 {offsets = [1, 0, 0], sizes = [16, 16, 128], strides = [1, 1, 1]} : vector<18x16x128xbf16> to vector<16x16x128xbf16>
    %54 = vector.shape_cast %53 : vector<16x16x128xbf16> to vector<256x128xbf16>
    %c5 = arith.constant 5 : index
    %c0_28 = arith.constant 0 : index
    %c0_29 = arith.constant 0 : index
    %55 = vector.load %arg2[%c5, %c0_28, %c0_29] : memref<9x128x128xbf16, #tpu.memory_space<vmem>>, vector<1x128x128xbf16>
    %56 = vector.shape_cast %55 : vector<1x128x128xbf16> to vector<128x128xbf16>
    %cst_30 = arith.constant dense<0.000000e+00> : vector<256x128xf32>
    %57 = tpu.matmul %54, %56, %cst_30 {dimension_numbers = #tpu.dot_dimension_numbers<[1], [0], [0], [1], [0, 0, 1, 1], [], []>} : vector<256x128xbf16>, vector<128x128xbf16>, vector<256x128xf32> -> vector<256x128xf32>
    %58 = arith.addf %52, %57 : vector<256x128xf32>
    %59 = vector.extract_strided_slice %46 {offsets = [2, 0, 0], sizes = [16, 16, 128], strides = [1, 1, 1]} : vector<18x16x128xbf16> to vector<16x16x128xbf16>
    %60 = vector.shape_cast %59 : vector<16x16x128xbf16> to vector<256x128xbf16>
    %c8 = arith.constant 8 : index
    %c0_31 = arith.constant 0 : index
    %c0_32 = arith.constant 0 : index
    %61 = vector.load %arg2[%c8, %c0_31, %c0_32] : memref<9x128x128xbf16, #tpu.memory_space<vmem>>, vector<1x128x128xbf16>
    %62 = vector.shape_cast %61 : vector<1x128x128xbf16> to vector<128x128xbf16>
    %cst_33 = arith.constant dense<0.000000e+00> : vector<256x128xf32>
    %63 = tpu.matmul %60, %62, %cst_33 {dimension_numbers = #tpu.dot_dimension_numbers<[1], [0], [0], [1], [0, 0, 1, 1], [], []>} : vector<256x128xbf16>, vector<128x128xbf16>, vector<256x128xf32> -> vector<256x128xf32>
    %64 = arith.addf %58, %63 : vector<256x128xf32>
    %cst_34 = arith.constant dense<0.000000e+00> : vector<128xf32>
    %65 = vector.multi_reduction <add>, %64, %cst_34 [0] : vector<256x128xf32> to vector<128xf32>
    %66 = vector.shape_cast %65 : vector<128xf32> to vector<1x128xf32>
    %67 = arith.mulf %64, %64 : vector<256x128xf32>
    %cst_35 = arith.constant dense<0.000000e+00> : vector<128xf32>
    %68 = vector.multi_reduction <add>, %67, %cst_35 [0] : vector<256x128xf32> to vector<128xf32>
    %69 = vector.shape_cast %68 : vector<128xf32> to vector<1x128xf32>
    %70 = tpu.concatenate %66, %69 in 0 : vector<1x128xf32>, vector<1x128xf32> -> vector<2x128xf32>
    %c0_36 = arith.constant 0 : index
    %c0_37 = arith.constant 0 : index
    %c0_38 = arith.constant 0 : index
    %71 = vector.load %arg4[%c0_36, %c0_37, %c0_38] : memref<1x2x128xf32, #tpu.memory_space<vmem>>, vector<1x2x128xf32>
    %72 = vector.shape_cast %71 : vector<1x2x128xf32> to vector<2x128xf32>
    %73 = vector.shape_cast %70 : vector<2x128xf32> to vector<1x2x128xf32>
    tpu.vector_store %arg4[%c0_36, %c0_37, %c0_38], %73 {strides = array<i32>} : memref<1x2x128xf32, #tpu.memory_space<vmem>>, vector<1x2x128xf32>,
    %74 = vector.shape_cast %64 : vector<256x128xf32> to vector<16x16x128xf32>
    %75 = arith.truncf %74 : vector<16x16x128xf32> to vector<16x16x128xbf16>
    %c0_39 = arith.constant 0 : index
    %c0_40 = arith.constant 0 : index
    %c0_41 = arith.constant 0 : index
    %c0_42 = arith.constant 0 : index
    %76 = vector.load %arg3[%c0_39, %c0_40, %c0_41, %c0_42] : memref<1x16x16x128xbf16, #tpu.memory_space<vmem>>, vector<1x16x16x128xbf16>
    %77 = vector.shape_cast %76 : vector<1x16x16x128xbf16> to vector<16x16x128xbf16>
    %78 = vector.shape_cast %75 : vector<16x16x128xbf16> to vector<1x16x16x128xbf16>
    tpu.vector_store %arg3[%c0_39, %c0_40, %c0_41, %c0_42], %78 {strides = array<i32>} : memref<1x16x16x128xbf16, #tpu.memory_space<vmem>>, vector<1x16x16x128xbf16>,
    return
  }
  func.func @transform_0(%arg0: i32) -> (i32, i32, i32, i32) {
    %c0_i32 = arith.constant 0 : i32
    %c0_i32_0 = arith.constant 0 : i32
    %c0_i32_1 = arith.constant 0 : i32
    %c0_i32_2 = arith.constant 0 : i32
    return %arg0, %c0_i32, %c0_i32_0, %c0_i32_1 : i32, i32, i32, i32
  }
  func.func @transform_1(%arg0: i32) -> (i32, i32, i32) {
    %c0_i32 = arith.constant 0 : i32
    %c0_i32_0 = arith.constant 0 : i32
    %c0_i32_1 = arith.constant 0 : i32
    %c0_i32_2 = arith.constant 0 : i32
    return %c0_i32, %c0_i32_0, %c0_i32_1 : i32, i32, i32
  }
  func.func @transform_2(%arg0: i32) -> (i32, i32, i32, i32) {
    %c0_i32 = arith.constant 0 : i32
    %c0_i32_0 = arith.constant 0 : i32
    %c0_i32_1 = arith.constant 0 : i32
    %c0_i32_2 = arith.constant 0 : i32
    return %arg0, %c0_i32, %c0_i32_0, %c0_i32_1 : i32, i32, i32, i32
  }
  func.func @transform_3(%arg0: i32) -> (i32, i32, i32) {
    %c0_i32 = arith.constant 0 : i32
    %c0_i32_0 = arith.constant 0 : i32
    %c0_i32_1 = arith.constant 0 : i32
    return %arg0, %c0_i32, %c0_i32_0 : i32, i32, i32
  }
}

</mosaic_0001>

<bundles_post_ra>
// kernel: tpu_custom_call.1
= control target key start
LH: loop header
LB: loop body
LE: loop exit
PB: predicated region body
PF: predicated region fallthrough
CT: control target
= control target key end

     0   :  { %9 = vsyncpa [#allocation3], 0  ;;  %s5825_s0 = inlined_call_operand.hbm [shape: bf16[2,16,16,128], index: 0, kind: input, shape index: {}]   ;;  %s5826_s1 = inlined_call_operand.hbm [shape: bf16[9,128,128], index: 1, kind: input, shape index: {}]   ;;  %s5827_s2 = inlined_call_operand.hbm [shape: bf16[2,16,16,128], index: 2, kind: output, shape index: {0}]   ;;  %s5828_s3 = inlined_call_operand.hbm [shape: f32[2,2,128], index: 3, kind: output, shape index: {1}]  }
   0x1   :  { %11 = vsyncpa [#allocation3 + $0x1], 0 }
   0x2   :  { %12 = vsyncpa [#allocation6], 0 }
   0x3   :  { %13 = vsyncpa [#allocation4], 0 }
   0x4   :  { %15 = vsyncpa [#allocation4 + $0x1], 0 }
   0x5   :  { %16 = vsyncpa [#allocation9], 0 }
   0x6   :  { %18 = vsyncpa [#allocation9 + $0x1], 0  ;;  %s5041_s12 = smov 0   ;;  %s5043_s13 = smov 0  }
   0x7   :  { %s5045_s14 = smov 0   ;;  %s5047_s15 = smov 0  }
   0x8 LB: > { %s5062_s16 = sadd.s32 4294967295, %s5010_s15   ;;  %s3499_s17 = sadd.s32 4294967294, %s5010_s15   ;;  %s5010_s15 = sphi %s5047_s15, %s5858_s15   ;;  %s5006_s14 = sphi %s5045_s14, %s5857_s14   ;;  %s5002_s13 = sphi %s5043_s13, %s5856_s13   ;;  %s4998_s12 = sphi %s5041_s12, %s5855_s12  }
   0x9   : > { %p44_p0 = scmp.ne.s32.totalorder %s5002_s13, %s4998_s12  ;;  %p5829_p1 = scmp.eq.s32.totalorder %s5062_s16, 0 }
   0xa   : > { %p95_p3 = scmp.eq.s32.totalorder %s3499_s17, 1  ;;  %p3500_p5 = scmp.ge.s32.totalorder %s5010_s15, 1 }
   0xb   : > { %p5071_p4 = por %p5829_p1, %p44_p0  ;;  %p128_p7 = scmp.lt.s32.totalorder %s5010_s15, 3 }
   0xc   : > { %p5076_p6 = por %p95_p3, %p44_p0  ;;  %s5012_s21 = smov [#allocation5]  }
   0xd   : > { %s5834_s18 = scalar_select %p5071_p4, 1, 0 }
   0xe   : > { %s5835_s19 = scalar_select %p5076_p6, 1, 0 }
   0xf   : > { %p5081_p8 = pnand %p3500_p5, %p128_p7  ;;  %s140_s22 = sshll.u32 %s5012_s21, 4  ;;  %s5085_s22 = int_to_ptr.vmem [resolvable:$true] %s140_s22 }
  0x10   : > { %s5097_s24 = sadd.s32 1, %s5010_s15   ;;  %s31_s25 = sadd.s32 1, %s5006_s14 }
  0x11   : > { %s5836_s20 = scalar_select %p5081_p8, 1, 0 }
  0x12   : > { %p4697_p9 = pneg %p5081_p8  ;;  %s28_s26 = ssub.s32 %s5010_s15, %s5097_s24 }
  0x13   : > { %s4850_s29 = scalar_lea.hbm %s5826_s1, 9216 }
  0x14   : > { %p5092_p11 = pnand %p4697_p9, %p5829_p1  ;;  %p4851_p12 = scmp.ne.s32.totalorder %s5826_s1, %s4850_s29 }
  0x15   : > { %p4857_p5 = scmp.lt.u32.totalorder %s4850_s29, %s5826_s1 }
  0x16   : > { %p4852_p13 = pneg %p5092_p11 }
  0x18   : > { %p4853_p0 = pnand %p4852_p13, %p4851_p12 }
  0x1a   : > { %p4854_p3 = pneg %p4853_p0 }
  0x1c   : > { %p4859_p7 = pnand %p4857_p5, %p4854_p3 }
  0x1e   : > { %4862 = shalt.err (!%p4859_p7)
}
  0x1f   : > { %s4863_s7 = scalar_lea.vmem %s5085_s22, 9216  ;;  %p4871_p2 = scmp.lt.s32.totalorder %s5085_s22, %s5085_s22 }
  0x20   : > { %p4864_p9 = scmp.ne.s32.totalorder %s5085_s22, %s4863_s7  ;;  %p4872_p6 = scmp.lt.s32.totalorder %s4863_s7, %s4863_s7 }
  0x22   : > { %p4866_p10 = pnand %p4864_p9, %p4852_p13  ;;  %p4873_p4 = por %p4872_p6, %p4871_p2 }
  0x24   : > { %p4867_p1 = pneg %p4866_p10 }
  0x26   : > { %p4874_p8 = pnand %p4873_p4, %p4867_p1 }
  0x28   : > { %4877 = shalt.err (!%p4874_p8)
}
  0x29   : > { %s5013_s8 = smov 64   ;;  %s5014_s9 = smov 4  }
  0x2a   : > { %4700 = dma.hbm_to_vmem [thread:$0]  (!%p5092_p11), %s5826_s1, 9216, %s5085_s22, [#allocation6], %s5013_s8, %s5013_s8, %s5014_s9  }
  0x2b   : > { %p29_p1 = scmp.eq.s32.totalorder %s28_s26, 0  ;;  %p38_p2 = scmp.ne.s32.totalorder %s5006_s14, %s5002_s13 }
  0x2c   : > { %p39_p4 = scmp.eq.s32.totalorder %s5010_s15, 0  ;;  %p4713_p6 = scmp.lt.s32.totalorder %s5010_s15, 2 }
  0x2d   : > { %s5131_s17 = scalar_select %p29_p1, %s5006_s14, %s31_s25  }
  0x2e   : > { %p40_p8 = por %p39_p4, %p38_p2  ;;  %p5838_p10 = scmp.eq.s32.totalorder %s5062_s16, 1 }
  0x2f   : > { %s154_s23 = sand.u32 1, %s5006_s14   ;;  %s3638_s27 = sshll.u32 %s5010_s15, 11 }
  0x30   : > { %p5135_p12 = por %p5838_p10, %p38_p2  ;;  %s3503_s28 = sshll.u32 %s154_s23, 7 }
  0x31   : > { %s5144_s4 = scalar_lea.hbm %s5825_s0, %s3638_s27  ;;  %s158_s22 = scalar_lea.vmem [#allocation2], %s3503_s28 }
  0x32   : > { %s165_s25 = sshll.u32 %s158_s22, 4  ;;  %p5146_p11 = pnand %p4713_p6, %p40_p8  ;;  %s5150_s25 = int_to_ptr.vmem [resolvable:$true] %s165_s25 }
  0x33   : > { %s5152_s5 = scalar_lea.sflag [#allocation3], %s154_s23  ;;  %s4878_s6 = scalar_lea.hbm %s5144_s4, 2048 }
  0x34   : > { %p4879_p13 = scmp.ne.s32.totalorder %s5144_s4, %s4878_s6  ;;  %p4880_p0 = pneg %p5146_p11 }
  0x35   : > { %s4883_s11 = scalar_lea.hbm %s5825_s0, 4096  ;;  %p4884_p7 = scmp.lt.u32.totalorder %s5144_s4, %s5825_s0 }
  0x36   : > { %p4881_p3 = pnand %p4880_p0, %p4879_p13  ;;  %p4885_p9 = scmp.lt.u32.totalorder %s4883_s11, %s4878_s6 }
  0x37   : > { %p4887_p2 = scmp.lt.u32.totalorder %s4878_s6, %s5144_s4 }
  0x38   : > { %p4882_p5 = pneg %p4881_p3  ;;  %p4886_p1 = por %p4885_p9, %p4884_p7 }
  0x3a   : > { %p4888_p4 = por %p4887_p2, %p4886_p1 }
  0x3c   : > { %p4889_p6 = pnand %p4888_p4, %p4882_p5 }
  0x3e   : > { %4892 = shalt.err (!%p4889_p6)
}
  0x3f   : > { %s4893_s23 = scalar_lea.vmem %s5150_s25, 2048  ;;  %s5015_s29 = smov [#allocation2]  }
  0x40   : > { %p4894_p8 = scmp.ne.s32.totalorder %s5150_s25, %s4893_s23  ;;  %s4898_s30 = sshll.u32 %s5015_s29, 4  ;;  %s4899_s30 = int_to_ptr.vmem [resolvable:$false] %s4898_s30 }
  0x41   : > { %s4900_s22 = scalar_lea.vmem %s4899_s30, 4096  ;;  %p4901_p3 = scmp.lt.s32.totalorder %s5150_s25, %s4899_s30 }
  0x42   : > { %p4896_p10 = pnand %p4894_p8, %p4880_p0  ;;  %p4902_p7 = scmp.lt.s32.totalorder %s4900_s22, %s4893_s23 }
  0x44   : > { %p4897_p13 = pneg %p4896_p10  ;;  %p4903_p9 = por %p4902_p7, %p4901_p3 }
  0x46   : > { %p4904_p1 = pnand %p4903_p9, %p4897_p13 }
  0x48   : > { %4907 = shalt.err (!%p4904_p1)
}
  0x49   : > { %4704 = dma.hbm_to_vmem [thread:$0]  (!%p5146_p11), %s5144_s4, 2048, %s5150_s25, %s5152_s5, %s5013_s8, %s5013_s8, %s5014_s9  }
  0x4a   : > { %p5841_p0 = scmp.ne.s32.totalorder %s5836_s20, 0 }
  0x4c   : > { %177 = sbr.rel (%p5841_p0) target bundleno = 667 (0x29b), region = 28 }
  0x53   : > { %s5186_s6 = sand.u32 1, %s5002_s13   ;;  %p5842_p5 = scmp.ne.s32.totalorder %s5834_s18, 0 }
  0x54   : > { %s3507_s7 = sshll.u32 %s5186_s6, 7  ;;  %s180_s10 = scalar_lea.sflag [#allocation3], %s5186_s6 }
  0x55   : > { %s5192_s26 = scalar_lea.vmem [#allocation2], %s3507_s7 }
  0x56   : > { %4981 = dma.done.wait (%p5842_p5), %s180_s10, 2048  }
  0x57   : > { %4983 = vsyncadd (%p5842_p5), %s180_s10, 4294965248  ;;  %p5843_p11 = scmp.eq.s32.totalorder %s5062_s16, 0 }
  0x59   : > { %4985 = dma.done.wait (%p5843_p11), [#allocation6], 9216   ;;  %p5844_p2 = pmov %p5843_p11 }
  0x5a   : > { %v4754_v0 = vld [vmem:[#allocation5 + $0xc0] sm:$0xff]   ;;  %v4756_v2 = vld [vmem:[#allocation5 + $0xc8] sm:$0xff]   ;;  %v4758_v4 = vld [vmem:[#allocation5 + $0xd0] sm:$0xff]   ;;  %vm473_vm0 = vsmask.f32 256  ;;  %vm472_vm1 = vcmask 1040384  }
  0x5b   : > { %4987 = vsyncadd (%p5844_p2), [#allocation6], 4294958080  ;;  %v4755_v1 = vld [vmem:[#allocation5 + $0x100] sm:$0xff]   ;;  %3983 = vmatprep.subr.bf16.mxu1 %v4754_v0  ;;  %v4757_v3 = vld [vmem:[#allocation5 + $0x108] sm:$0xff]   ;;  %vm1216_vm3 = vsmask.f32 7424 }
  0x5c   : > { %4175 = vmatprep.subr.bf16.mxu0 %v4755_v1  ;;  %3984 = vmatpush3.bf16.msra.mxu1 %v4754_v0  ;;  %v4759_v5 = vld [vmem:[#allocation5 + $0x110] sm:$0xff]   ;;  %v4760_v6 = vld [vmem:[#allocation5 + $0xd8] sm:$0xff]   ;;  %v4762_v8 = vld [vmem:[#allocation5 + $0xe0] sm:$0xff]   ;;  %vm2239_vm4 = vcmask 1046528   ;;  %s5720_s18 = scalar_lea.vmem [#allocation7], %s3507_s7  ;;  %s3671_s20 = sshll.u32 %s5062_s16, 11 }
  0x5d   : > { %4176 = vmatpush3.bf16.msra.mxu0 %v4755_v1  ;;  %3985 = vmatprep.subr.bf16.mxu1 %v4756_v2  ;;  %v4761_v7 = vld [vmem:[#allocation5 + $0x118] sm:$0xff]   ;;  %v4763_v9 = vld [vmem:[#allocation5 + $0x120] sm:$0xff]   ;;  %v4764_v10 = vld [vmem:[#allocation5 + $0xe8] sm:$0xff]   ;;  %s3371_s8 = sshll.u32 %s5720_s18, 4  ;;  %s5745_s25 = scalar_lea.hbm %s5827_s2, %s3671_s20  ;;  %s5747_s8 = int_to_ptr.vmem [resolvable:$true] %s3371_s8 }
  0x5e   : > { %4177 = vmatprep.subr.bf16.mxu0 %v4757_v3  ;;  %v4765_v11 = vld [vmem:[#allocation5 + $0x128] sm:$0xff]   ;;  %v4770_v12 = vld [vmem:[%s5192_s26] sm:$0xff]   ;;  %v4766_v16 = vld [vmem:[#allocation5 + $0xf0] sm:$0xff]   ;;  %s3353_s5 = scalar_lea.sflag [#allocation4], %s5186_s6  ;;  %s4908_s11 = scalar_lea.vmem %s5747_s8, 2048 }
  0x5f   : > { %v4771_v13 = vld [vmem:[%s5192_s26 + $0x8] sm:$0xff]   ;;  %v329_v14 = vshrl.u32 %v4770_v12, 16  ;;  %v332_v15 = vshll.u32 %v4770_v12, 16  ;;  %vm5206_vm2 = vmand %vm472_vm1, %vm473_vm0  ;;  %v4767_v20 = vld [vmem:[#allocation5 + $0x130] sm:$0xff]   ;;  %p4909_p4 = scmp.ne.s32.totalorder %s5747_s8, %s4908_s11  ;;  %s5017_s27 = smov [#allocation7]  }
  0x60   : > { %3986 = vmatpush3.bf16.msra.mxu1 %v4756_v2  ;;  %v336_v18 = vshrl.u32 %v4771_v13, 16  ;;  %v339_v19 = vshll.u32 %v4771_v13, 16  ;;  %v4775_v23 = vld [vmem:[%s5192_s26 + $0x10] sm:$0xff]   ;;  %v4768_v26 = vld [vmem:[#allocation5 + $0xf8] sm:$0xff]   ;;  %v4772_v44 = vld [vmem:[#allocation5] sm:$0xff]   ;;  %s4912_s28 = sshll.u32 %s5017_s27, 4  ;;  %s4913_s28 = int_to_ptr.vmem [resolvable:$false] %s4912_s28 }
  0x61   : > { %4178 = vmatpush3.bf16.msra.mxu0 %v4757_v3  ;;  %3987 = vmatprep.subr.bf16.mxu1 %v4758_v4  ;;  %v331_v21 = vrot.slane %v329_v14, 7  ;;  %v4776_v30 = vld [vmem:[%s5192_s26 + $0x18] sm:$0xff]   ;;  %v343_v33 = vshrl.u32 %v4775_v23, 16  ;;  %v346_v34 = vshll.u32 %v4775_v23, 16  ;;  %v4773_v52 = vld [vmem:[#allocation5 + $0x1c0] sm:$0xff]   ;;  %v4781_v58 = vld [vmem:[%s5192_s26 + $0x28] sm:$0xff]   ;;  %p4910_p6 = pnand %p4909_p4, %p5135_p12  ;;  %p4915_p10 = scmp.lt.s32.totalorder %s5747_s8, %s4913_s28 }
  0x62   : > { %4179 = vmatprep.subr.bf16.mxu0 %v4759_v5  ;;  %v338_v22 = vrot.slane %v336_v18, 7  ;;  %v4769_v35 = vld [vmem:[#allocation5 + $0x138] sm:$0xff]   ;;  %v350_v46 = vshrl.u32 %v4776_v30, 16  ;;  %v353_v47 = vshll.u32 %v4776_v30, 16  ;;  %v4780_v55 = vld [vmem:[%s5192_s26 + $0x20] sm:$0xff]   ;;  %v4774_v60 = vld [vmem:[#allocation5 + $0x1c8] sm:$0xff]  }
  0x63   : > { %v334_v24 = vor.u32 %v332_v15, %v331_v21  ;;  %v5213_v25 = vsel %vm5206_vm2, %v331_v21, 0  ;;  %v345_v42 = vrot.slane %v343_v33, 7  ;;  %v4777_v0 = vld [vmem:[#allocation5 + $0x8] sm:$0xff]   ;;  %v4782_v18 = vld [vmem:[#allocation5 + $0x10] sm:$0xff]   ;;  %p4911_p8 = pneg %p4910_p6  ;;  %s4914_s23 = scalar_lea.vmem %s4913_s28, 4096 }
  0x64   : > { %3988 = vmatpush3.bf16.msra.mxu1 %v4758_v4  ;;  %v1233_v27 = vshll.u32 %v5213_v25, 16  ;;  %v341_v28 = vor.u32 %v339_v19, %v338_v22  ;;  %v5218_v29 = vsel %vm5206_vm2, %v338_v22, 0  ;;  %v352_v54 = vrot.slane %v350_v46, 7  ;;  %p4916_p13 = scmp.lt.s32.totalorder %s4914_s23, %s4908_s11 }
  0x65   : > { %4180 = vmatpush3.bf16.msra.mxu0 %v4759_v5  ;;  %3989 = vmatprep.subr.bf16.mxu1 %v4760_v6  ;;  %v5223_v31 = vsel %vm5206_vm2, 0, %v334_v24  ;;  %v1245_v32 = vshll.u32 %v5218_v29, 16  ;;  %v348_v49 = vor.u32 %v346_v34, %v345_v42  ;;  %v5237_v50 = vsel %vm5206_vm2, %v345_v42, 0  ;;  %v4779_v34 = vld [vmem:[#allocation5 + $0x1d8] sm:$0xff]  }
  0x66   : > { %4181 = vmatprep.subr.bf16.mxu0 %v4761_v7  ;;  %3999 = vmatprep.mubr.bf16.mxu1 %v5223_v31  ;;  %v1226_v36 = vshrl.u32 %v5223_v31, 16  ;;  %v1228_v37 = vshll.u32 %v5223_v31, 16  ;;  %v5231_v38 = vsel %vm5206_vm2, 0, %v341_v28  ;;  %v1235_v39 = vrot.slane %v1233_v27, 1  ;;  %v4786_v27 = vld [vmem:[%s5192_s26 + $0x38] sm:$0xff]   ;;  %p4917_p3 = por %p4916_p13, %p4915_p10 }
  0x67   : > { %v1238_v40 = vshrl.u32 %v5231_v38, 16  ;;  %v1240_v41 = vshll.u32 %v5231_v38, 16  ;;  %v1247_v45 = vrot.slane %v1245_v32, 1  ;;  %v1257_v53 = vshll.u32 %v5237_v50, 16 }
  0x68   : > { %3990 = vmatpush3.bf16.msra.mxu1 %v4760_v6  ;;  %v1230_v43 = vrot.slane %v1228_v37, 1  ;;  %v5243_v57 = vsel %vm5206_vm2, 0, %v348_v49  ;;  %v355_v2 = vor.u32 %v353_v47, %v352_v54  ;;  %v5257_v3 = vsel %vm5206_vm2, %v352_v54, 0  ;;  %v4787_v47 = vld [vmem:[#allocation5 + $0x18] sm:$0xff]   ;;  %p4918_p7 = pnand %p4917_p3, %p4911_p8 }
  0x69   : > { %4182 = vmatpush3.bf16.msra.mxu0 %v4761_v7  ;;  %3991 = vmatprep.subr.bf16.mxu1 %v4762_v8  ;;  %v1242_v48 = vrot.slane %v1240_v41, 1  ;;  %v1250_v61 = vshrl.u32 %v5243_v57, 16  ;;  %v1252_v62 = vshll.u32 %v5243_v57, 16  ;;  %v1259_v63 = vrot.slane %v1257_v53, 1 }
  0x6a   : > { %4183 = vmatprep.subr.bf16.mxu0 %v4763_v9  ;;  %v1231_v51 = vor.u32 %v1230_v43, %v1226_v36  ;;  %v357_v4 = vshrl.u32 %v4780_v55, 16  ;;  %v1269_v6 = vshll.u32 %v5257_v3, 16  ;;  %v360_v7 = vshll.u32 %v4780_v55, 16  ;;  %v4783_v55 = vld [vmem:[#allocation5 + $0x1e0] sm:$0xff]  }
  0x6b   : > { %v1243_v56 = vor.u32 %v1242_v48, %v1238_v40  ;;  %v1254_v5 = vrot.slane %v1252_v62, 1  ;;  %v378_v49 = vshrl.u32 %v4786_v27, 16 }
  0x6c   : > { %3992 = vmatpush3.bf16.msra.mxu1 %v4762_v8  ;;  %v5247_v59 = vsel %vm1216_vm3, %v1231_v51, %v1235_v39  ;;  %v364_v8 = vshrl.u32 %v4781_v58, 16  ;;  %v1271_v15 = vrot.slane %v1269_v6, 1  ;;  %v381_v51 = vshll.u32 %v4786_v27, 16  ;;  %v4791_v6 = vld [vmem:[%s5192_s26 + $0x48] sm:$0xff]   ;;  %v4794_v27 = vld [vmem:[%s5192_s26 + $0x50] sm:$0xff]  }
  0x6d   : > { %4184 = vmatpush3.bf16.msra.mxu0 %v4763_v9  ;;  %3993 = vmatprep.subr.bf16.mxu1 %v4764_v10  ;;  %v5253_v1 = vsel %vm1216_vm3, %v1243_v56, %v1247_v45  ;;  %v5263_v9 = vsel %vm5206_vm2, 0, %v355_v2  ;;  %v1255_v12 = vor.u32 %v1254_v5, %v1250_v61 }
  0x6e   : > { %4185 = vmatprep.subr.bf16.mxu0 %v4765_v11  ;;  %4191 = vmatprep.mubr.bf16.mxu0 %v5247_v59  ;;  %v1262_v13 = vshrl.u32 %v5263_v9, 16  ;;  %v1264_v14 = vshll.u32 %v5263_v9, 16  ;;  %v366_v21 = vrot.slane %v364_v8, 7 }
  0x6f   : > { %v5274_v22 = vsel %vm1216_vm3, %v1255_v12, %v1259_v63 }
  0x70   : > { %3994 = vmatpush3.bf16.msra.mxu1 %v4764_v10  ;;  %v359_v10 = vrot.slane %v357_v4, 7  ;;  %v1266_v23 = vrot.slane %v1264_v14, 1  ;;  %v5286_v32 = vsel %vm5206_vm2, %v366_v21, 0 }
  0x71   : > { %4186 = vmatpush3.bf16.msra.mxu0 %v4765_v11  ;;  %3995 = vmatprep.subr.bf16.mxu1 %v4766_v16  ;;  %v367_v11 = vshll.u32 %v4781_v58, 16  ;;  %v1293_v40 = vshll.u32 %v5286_v32, 16 }
  0x72   : > { %4187 = vmatprep.subr.bf16.mxu0 %v4767_v20  ;;  %v362_v19 = vor.u32 %v360_v7, %v359_v10  ;;  %v1267_v33 = vor.u32 %v1266_v23, %v1262_v13  ;;  %v4792_v7 = vld [vmem:[#allocation5 + $0x20] sm:$0xff]  }
  0x73   : > { %v369_v30 = vor.u32 %v367_v11, %v366_v21  ;;  %v1295_v54 = vrot.slane %v1293_v40, 1  ;;  %v4795_v40 = vld [vmem:[%s5192_s26 + $0x58] sm:$0xff]  }
  0x74   : > { %3996 = vmatpush3.bf16.msra.mxu1 %v4766_v16  ;;  %v4778_v16 = vld [vmem:[#allocation5 + $0x1d0] sm:$0xff]   ;;  %v5282_v28 = vsel %vm5206_vm2, 0, %v362_v19  ;;  %v5296_v43 = vsel %vm1216_vm3, %v1267_v33, %v1271_v15 }
  0x75   : > { %4188 = vmatpush3.bf16.msra.mxu0 %v4767_v20  ;;  %3997 = vmatprep.subr.bf16.mxu1 %v4768_v26  ;;  %v5271_v20 = vsel %vm5206_vm2, %v359_v10, 0  ;;  %v1276_v36 = vshll.u32 %v5282_v28, 16  ;;  %v5292_v39 = vsel %vm5206_vm2, 0, %v369_v30  ;;  %v4784_v10 = vld [vmem:[#allocation5 + $0x1e8] sm:$0xff]  }
  0x76   : > { %4189 = vmatprep.subr.bf16.mxu0 %v4769_v35  ;;  %v1281_v24 = vshll.u32 %v5271_v20, 16  ;;  %v1286_v45 = vshrl.u32 %v5292_v39, 16  ;;  %v1288_v46 = vshll.u32 %v5292_v39, 16 }
  0x78   : > { %3998 = vmatpush3.bf16.msra.mxu1 %v4768_v26  ;;  %v4785_v26 = vld [vmem:[%s5192_s26 + $0x30] sm:$0xff]   ;;  %v1283_v37 = vrot.slane %v1281_v24, 1  ;;  %v1290_v53 = vrot.slane %v1288_v46, 1  ;;  %v395_v46 = vshll.u32 %v4791_v6, 16 }
  0x79   : > { %4190 = vmatpush3.bf16.msra.mxu0 %v4769_v35  ;;  %4031 = vmatprep.subr.bf16.mxu1 %v4772_v44  ;;  %v1274_v35 = vshrl.u32 %v5282_v28, 16  ;;  %v371_v41 = vshrl.u32 %v4785_v26, 16  ;;  %v374_v42 = vshll.u32 %v4785_v26, 16  ;;  %v392_v26 = vshrl.u32 %v4791_v6, 16  ;;  %v4793_v6 = vld [vmem:[#allocation5 + $0x80] sm:$0xff]  }
  0x7a   : > { %4223 = vmatprep.subr.bf16.mxu0 %v4773_v52  ;;  %v1291_v62 = vor.u32 %v1290_v53, %v1286_v45 }
  0x7b   : > { %4000 = vmatmul.mubr.bf16.vlgmr.msra.gmra.mrb[0].mxu1 %v5231_v38  ;;  %v373_v48 = vrot.slane %v371_v41, 7  ;;  %v4796_v41 = vld [vmem:[#allocation5 + $0x28] sm:$0xff]   ;;  %v5346_v45 = vrot.slane %v392_v26, 7 }
  0x7c   : > { %4192 = vmatmul.mubr.bf16.vlgmr.msra.gmra.mrb[0].mxu0 %v5253_v1  ;;  %4032 = vmatpush3.bf16.msra.mxu1 %v4772_v44  ;;  %v1278_v44 = vrot.slane %v1276_v36, 1  ;;  %v5323_v8 = vsel %vm1216_vm3, %v1291_v62, %v1295_v54  ;;  %v4798_v54 = vld [vmem:[%s5192_s26 + $0x60] sm:$0xff]  }
  0x7d   : > { %4224 = vmatpush3.bf16.msra.mxu0 %v4773_v52  ;;  %4003 = vmatprep.mubr.bf16.mxu1 %v5243_v57  ;;  %v376_v56 = vor.u32 %v374_v42, %v373_v48  ;;  %v5305_v58 = vsel %vm5206_vm2, %v373_v48, 0  ;;  %5848 = vst [vmem:[#allocation15_spill] sm:$0xff] %v5323_v8  ;;  %v4789_v48 = vld [vmem:[#allocation5 + $0x1f8] sm:$0xff]   ;;  %v413_v62 = vshrl.u32 %v4798_v54, 16 }
  0x7e   : > { %4225 = vmatprep.subr.bf16.mxu0 %v4774_v60  ;;  %4033 = vmatprep.subr.bf16.mxu1 %v4777_v0  ;;  %v1279_v52 = vor.u32 %v1278_v44, %v1274_v35  ;;  %v1305_v63 = vshll.u32 %v5305_v58, 16 }
  0x7f   : > { %4195 = vmatprep.mubr.bf16.mxu0 %v5274_v22  ;;  %v5315_v2 = vsel %vm5206_vm2, 0, %v376_v56  ;;  %v4799_v56 = vld [vmem:[%s5192_s26 + $0x68] sm:$0xff]  }
  0x80   : > { %4034 = vmatpush3.bf16.msra.mxu1 %v4777_v0  ;;  %v5308_v61 = vsel %vm1216_vm3, %v1279_v52, %v1283_v37  ;;  %v4790_v0 = vld [vmem:[%s5192_s26 + $0x40] sm:$0xff]   ;;  %v1298_v11 = vshrl.u32 %v5315_v2, 16  ;;  %v1300_v12 = vshll.u32 %v5315_v2, 16  ;;  %v1307_v19 = vrot.slane %v1305_v63, 1 }
  0x81   : > { %4226 = vmatpush3.bf16.msra.mxu0 %v4774_v60  ;;  %4035 = vmatprep.subr.bf16.mxu1 %v4782_v18  ;;  %v380_v60 = vrot.slane %v378_v49, 7  ;;  %5847 = vst [vmem:[#allocation14_spill] sm:$0xff] %v5308_v61  ;;  %v385_v15 = vshrl.u32 %v4790_v0, 16  ;;  %v399_v37 = vshrl.u32 %v4794_v27, 16  ;;  %v416_v63 = vshll.u32 %v4798_v54, 16  ;;  %v5397_v54 = vld [vmem:[#allocation5 + $0x180] sm:$0xff]  }
  0x82   : > { %4227 = vmatprep.subr.bf16.mxu0 %v4778_v16 }
  0x83   : > { %4004 = vmatmul.mubr.bf16.gmra.mrb[4].mxu1 %v5263_v9  ;;  %v383_v4 = vor.u32 %v381_v51, %v380_v60  ;;  %v5319_v5 = vsel %vm5206_vm2, %v380_v60, 0  ;;  %v5335_v24 = vrot.slane %v385_v15, 7  ;;  %v402_v51 = vshll.u32 %v4794_v27, 16 }
  0x84   : > { %4196 = vmatmul.mubr.bf16.gmra.mrb[4].mxu0 %v5296_v43  ;;  %4007 = vmatprep.mubr.bf16.mxu1 %v5282_v28  ;;  %v1317_v14 = vshll.u32 %v5319_v5, 16  ;;  %v401_v53 = vrot.slane %v399_v37, 7  ;;  %v4797_v37 = vld [vmem:[#allocation5 + $0x88] sm:$0xff]  }
  0x85   : > { %4228 = vmatpush3.bf16.msra.mxu0 %v4778_v16  ;;  %4036 = vmatpush3.bf16.msra.mxu1 %v4782_v18  ;;  %v5329_v13 = vsel %vm5206_vm2, 0, %v383_v4  ;;  %v388_v16 = vshll.u32 %v4790_v0, 16  ;;  %v1302_v18 = vrot.slane %v1300_v12, 1  ;;  %v4800_v0 = vld [vmem:[#allocation5 + $0x30] sm:$0xff]   ;;  %v397_v4 = vor.u32 %v395_v46, %v5346_v45 }
  0x86   : > { %4229 = vmatprep.subr.bf16.mxu0 %v4779_v34  ;;  %4037 = vmatprep.subr.bf16.mxu1 %v4787_v47  ;;  %v1310_v21 = vshrl.u32 %v5329_v13, 16  ;;  %v1312_v23 = vshll.u32 %v5329_v13, 16  ;;  %v1319_v35 = vrot.slane %v1317_v14, 1  ;;  %v415_v12 = vrot.slane %v413_v62, 7 }
  0x87   : > { %4199 = vmatprep.mubr.bf16.mxu0 %v5308_v61  ;;  %v1303_v30 = vor.u32 %v1302_v18, %v1298_v11  ;;  %v390_v36 = vor.u32 %v388_v16, %v5335_v24  ;;  %v404_v11 = vor.u32 %v402_v51, %v401_v53  ;;  %v423_v14 = vshll.u32 %v4799_v56, 16 }
  0x88   : > { %v1314_v33 = vrot.slane %v1312_v23, 1  ;;  %v418_v23 = vor.u32 %v416_v63, %v415_v12  ;;  %v5368_v26 = vsel %vm5206_vm2, 0, %v397_v4 }
  0x89   : > { %4230 = vmatpush3.bf16.msra.mxu0 %v4779_v34  ;;  %4038 = vmatpush3.bf16.msra.mxu1 %v4787_v47  ;;  %v4788_v34 = vld [vmem:[#allocation5 + $0x1f0] sm:$0xff]   ;;  %v5343_v42 = vsel %vm1216_vm3, %v1303_v30, %v1307_v19  ;;  %v406_v47 = vshrl.u32 %v4795_v40, 16  ;;  %v5350_v49 = vsel %vm5206_vm2, 0, %v390_v36  ;;  %v4803_v19 = vld [vmem:[%s5192_s26 + $0x78] sm:$0xff]   ;;  %v5380_v36 = vsel %vm5206_vm2, %v5335_v24, 0 }
  0x8a   : > { %4231 = vmatprep.subr.bf16.mxu0 %v4783_v55  ;;  %4039 = vmatprep.subr.bf16.mxu1 %v4792_v7  ;;  %v1315_v44 = vor.u32 %v1314_v33, %v1310_v21  ;;  %v4804_v30 = vld [vmem:[#allocation5 + $0x38] sm:$0xff]   ;;  %v5374_v33 = vsel %vm5206_vm2, 0, %v404_v11  ;;  %v4801_v24 = vld [vmem:[#allocation5 + $0x90] sm:$0xff]   ;;  %v1336_v11 = vshll.u32 %v5368_v26, 16 }
  0x8b   : > { %4008 = vmatmul.mubr.bf16.gmra.mrb[8].mxu1 %v5292_v39  ;;  %v408_v60 = vrot.slane %v406_v47, 7  ;;  %v437_v47 = vshll.u32 %v4803_v19, 16  ;;  %v1346_v63 = vshrl.u32 %v5374_v33, 16 }
  0x8c   : > { %4200 = vmatmul.mubr.bf16.gmra.mrb[8].mxu0 %v5323_v8  ;;  %4011 = vmatprep.mubr.bf16.mxu1 %v5315_v2  ;;  %v5353_v52 = vsel %vm1216_vm3, %v1315_v44, %v1319_v35  ;;  %v434_v35 = vshrl.u32 %v4803_v19, 16  ;;  %v5390_v44 = vsel %vm5206_vm2, 0, %v418_v23 }
  0x8d   : > { %4232 = vmatpush3.bf16.msra.mxu0 %v4783_v55  ;;  %4040 = vmatpush3.bf16.msra.mxu1 %v4792_v7  ;;  %v409_v55 = vshll.u32 %v4795_v40, 16  ;;  %v420_v7 = vshrl.u32 %v4799_v56, 16  ;;  %v1324_v40 = vshll.u32 %v5350_v49, 16 }
  0x8e   : > { %4233 = vmatprep.subr.bf16.mxu0 %v4784_v10  ;;  %4203 = vmatprep.mubr.bf16.mxu0 %v5343_v42  ;;  %v436_v62 = vrot.slane %v434_v35, 7  ;;  %v1372_v35 = vshll.u32 %v5390_v44, 16 }
  0x8f   : > { %4041 = vmatprep.subr.bf16.mxu1 %v4796_v41  ;;  %v5363_v15 = vrot.slane %v420_v7, 7  ;;  %v411_v21 = vor.u32 %v409_v55, %v408_v60  ;;  %v5401_v55 = vsel %vm5206_vm2, %v401_v53, 0  ;;  %v5410_v4 = vrot.slane %v1324_v40, 1 }
  0x90   : > { %v5415_v53 = vsel %vm5206_vm2, %v5346_v45, 0  ;;  %v5420_v7 = vsel %vm5206_vm2, %v408_v60, 0  ;;  %v5433_v60 = vsel %vm5206_vm2, %v415_v12, 0  ;;  %v439_v23 = vor.u32 %v437_v47, %v436_v62 }
  0x91   : > { %4234 = vmatpush3.bf16.msra.mxu0 %v4784_v10  ;;  %4042 = vmatpush3.bf16.msra.mxu1 %v4796_v41  ;;  %v4802_v10 = vld [vmem:[%s5192_s26 + $0x70] sm:$0xff]   ;;  %v5386_v41 = vsel %vm5206_vm2, 0, %v411_v21  ;;  %v1365_v21 = vshll.u32 %v5420_v7, 16 }
  0x92   : > { %4235 = vmatprep.subr.bf16.mxu0 %v4788_v34  ;;  %4043 = vmatprep.subr.bf16.mxu1 %v4800_v0  ;;  %v427_v16 = vshrl.u32 %v4802_v10, 16  ;;  %v430_v18 = vshll.u32 %v4802_v10, 16  ;;  %v1360_v19 = vshll.u32 %v5386_v41, 16 }
  0x93   : > { %4012 = vmatmul.mubr.bf16.gmra.mrb[12].mxu1 %v5329_v13 }
  0x94   : > { %4204 = vmatmul.mubr.bf16.gmra.mrb[12].mxu0 %v5353_v52  ;;  %4015 = vmatprep.mubr.bf16.mxu1 %v5350_v49  ;;  %v5370_v27 = vrot.slane %v427_v16, 7  ;;  %v1358_v16 = vshrl.u32 %v5386_v41, 16  ;;  %v1362_v40 = vrot.slane %v1360_v19, 1 }
  0x95   : > { %4236 = vmatpush3.bf16.msra.mxu0 %v4788_v34  ;;  %4239 = vmatprep.mubr.bf16.mxu0 %v5253_v1  ;;  %v425_v34 = vor.u32 %v423_v14, %v5363_v15 }
  0x96   : > { %4237 = vmatprep.subr.bf16.mxu0 %v4789_v48  ;;  %4044 = vmatpush3.bf16.msra.mxu1 %v4800_v0  ;;  %v432_v46 = vor.u32 %v430_v18, %v5370_v27  ;;  %v1348_v0 = vshll.u32 %v5374_v33, 16  ;;  %v4805_v18 = vld [vmem:[#allocation5 + $0x98] sm:$0xff]  }
  0x97   : > { %4045 = vmatprep.subr.bf16.mxu1 %v4804_v30  ;;  %v5406_v56 = vsel %vm5206_vm2, 0, %v425_v34  ;;  %v1370_v34 = vshrl.u32 %v5390_v44, 16 }
  0x98   : > { %v5424_v10 = vsel %vm5206_vm2, 0, %v432_v46  ;;  %v1350_v14 = vrot.slane %v1348_v0, 1  ;;  %v1367_v46 = vrot.slane %v1365_v21, 1  ;;  %v1377_v0 = vshll.u32 %v5433_v60, 16 }
  0x99   : > { %4238 = vmatpush3.bf16.msra.mxu0 %v4789_v48  ;;  %v1382_v47 = vshrl.u32 %v5406_v56, 16  ;;  %v1396_v51 = vshll.u32 %v5424_v10, 16  ;;  %v4807_v48 = vld [vmem:[#allocation5 + $0xa0] sm:$0xff]  }
  0x9a   : > { %4271 = vmatprep.subr.bf16.mxu0 %v4793_v6  ;;  %4046 = vmatpush3.bf16.msra.mxu1 %v4804_v30  ;;  %v1351_v30 = vor.u32 %v1350_v14, %v1346_v63  ;;  %v1384_v63 = vshll.u32 %v5406_v56, 16  ;;  %v1363_v14 = vor.u32 %v1362_v40, %v1358_v16  ;;  %v1379_v19 = vrot.slane %v1377_v0, 1 }
  0x9b   : > { %4016 = vmatmul.mubr.bf16.gmra.mrb[16].mxu1 %v5368_v26  ;;  %4079 = vmatprep.subr.bf16.mxu1 %v5397_v54 }
  0x9c   : > { %4240 = vmatmul.mubr.bf16.vlgmr.msra.gmra.mrb[0].mxu0 %v5274_v22  ;;  %4019 = vmatprep.mubr.bf16.mxu1 %v5374_v33  ;;  %v5461_v16 = vsel %vm1216_vm3, %v1363_v14, %v1367_v46 }
  0x9d   : > { %4272 = vmatpush3.bf16.msra.mxu0 %v4793_v6  ;;  %4243 = vmatprep.mubr.bf16.mxu0 %v5296_v43  ;;  %v1353_v6 = vshll.u32 %v5401_v55, 16 }
  0x9e   : > { %4273 = vmatprep.subr.bf16.mxu0 %v4797_v37 }
  0x9f   : > { %v1355_v45 = vrot.slane %v1353_v6, 1  ;;  %v5441_v6 = vsel %vm5206_vm2, %v5363_v15, 0  ;;  %v5455_v15 = vsel %vm5206_vm2, %v5370_v27, 0  ;;  %v5466_v27 = vsel %vm5206_vm2, %v436_v62, 0 }
  0xa0   : > { %v1389_v21 = vshll.u32 %v5441_v6, 16  ;;  %v1401_v0 = vshll.u32 %v5455_v15, 16  ;;  %v1334_v62 = vshrl.u32 %v5368_v26, 16 }
  0xa1   : > { %4274 = vmatpush3.bf16.msra.mxu0 %v4797_v37  ;;  %v5445_v12 = vsel %vm1216_vm3, %v1351_v30, %v1355_v45  ;;  %v1374_v37 = vrot.slane %v1372_v35, 1  ;;  %v1386_v30 = vrot.slane %v1384_v63, 1  ;;  %v1394_v35 = vshrl.u32 %v5424_v10, 16 }
  0xa2   : > { %4275 = vmatprep.subr.bf16.mxu0 %v4801_v24  ;;  %v1391_v40 = vrot.slane %v1389_v21, 1  ;;  %v1398_v63 = vrot.slane %v1396_v51, 1  ;;  %v1687_v21 = vshll.u32 %v5466_v27, 16 }
  0xa3   : > { %4020 = vmatmul.mubr.bf16.gmra.mrb[20].mxu1 %v5386_v41  ;;  %v1375_v45 = vor.u32 %v1374_v37, %v1370_v34  ;;  %v1387_v37 = vor.u32 %v1386_v30, %v1382_v47  ;;  %v4809_v47 = vld [vmem:[#allocation5 + $0xa8] sm:$0xff]  }
  0xa4   : > { %4244 = vmatmul.mubr.bf16.gmra.mrb[4].mxu0 %v5308_v61  ;;  %4023 = vmatprep.mubr.bf16.mxu1 %v5390_v44  ;;  %v1341_v61 = vshll.u32 %v5415_v53, 16 }
  0xa5   : > { %4247 = vmatprep.mubr.bf16.mxu0 %v5323_v8  ;;  %4276 = vmatpush3.bf16.msra.mxu0 %v4801_v24  ;;  %v5470_v24 = vsel %vm5206_vm2, 0, %v439_v23  ;;  %v5473_v34 = vsel %vm1216_vm3, %v1375_v45, %v1379_v19  ;;  %v1403_v8 = vrot.slane %v1401_v0, 1  ;;  %v5481_v17 = vsel %vm1216_vm3, %v1387_v37, %v1391_v40 }
  0xa6   : > { %4277 = vmatprep.subr.bf16.mxu0 %v4805_v18  ;;  %v1680_v46 = vshrl.u32 %v5470_v24, 16  ;;  %v1682_v14 = vshll.u32 %v5470_v24, 16  ;;  %v1399_v23 = vor.u32 %v1398_v63, %v1394_v35  ;;  %v1338_v19 = vrot.slane %v1336_v11, 1 }
  0xa7   : > { %v1689_v45 = vrot.slane %v1687_v21, 1  ;;  %v5849_v40 = vshrl.u32 %v5350_v49, 16  ;;  %v5850_v35 = vshll.u32 %v5380_v36, 16  ;;  %v1343_v63 = vrot.slane %v1341_v61, 1  ;;  %v4815_v61 = vld [vmem:[#allocation5 + $0x140] sm:$0xff]  }
  0xa8   : > { %v1684_v51 = vrot.slane %v1682_v14, 1  ;;  %v5485_v30 = vsel %vm1216_vm3, %v1399_v23, %v1403_v8  ;;  %v1339_v37 = vor.u32 %v1338_v19, %v1334_v62  ;;  %v4811_v8 = vld [vmem:[#allocation5 + $0xb0] sm:$0xff]   ;;  %v4808_v62 = vld [vmem:[#allocation5 + $0x188] sm:$0xff]   ;;  %v4812_v19 = vld [vmem:[#allocation5 + $0x198] sm:$0xff]  }
  0xa9   : > { %4278 = vmatpush3.bf16.msra.mxu0 %v4805_v18  ;;  %v1327_v11 = vor.u32 %v5410_v4, %v5849_v40  ;;  %v1331_v0 = vrot.slane %v5850_v35, 1  ;;  %v4813_v4 = vld [vmem:[#allocation5 + $0xb8] sm:$0xff]   ;;  %v4810_v23 = vld [vmem:[#allocation5 + $0x190] sm:$0xff]   ;;  %v2564_v40 = vrot.slane %v5466_v27, 1  ;;  %v2245_v27 = vrot.slane %v5231_v38, 1 }
  0xaa   : > { %4279 = vmatprep.subr.bf16.mxu0 %v4807_v48  ;;  %v1685_v18 = vor.u32 %v1684_v51, %v1680_v46  ;;  %v5502_v46 = vsel %vm1216_vm3, %v1339_v37, %v1343_v63  ;;  %v4818_v51 = vld [vmem:[#allocation5 + $0x1b0] sm:$0xff]   ;;  %v2242_v37 = vrot.slane %v5223_v31, 1  ;;  %v2246_v63 = vrot.slane %v5218_v29, 1 }
  0xab   : > { %4024 = vmatmul.mubr.bf16.gmra.mrb[24].mxu1 %v5406_v56  ;;  %v5499_v21 = vsel %vm1216_vm3, %v1327_v11, %v1331_v0  ;;  %v4820_v11 = vld [vmem:[#allocation5 + $0x1b8] sm:$0xff]   ;;  %v2243_v0 = vrot.slane %v5213_v25, 1  ;;  %v4817_v25 = vld [vmem:[#allocation5 + $0x148] sm:$0xff]   ;;  %v2248_v29 = vrot.slane %v5243_v57, 1 }
  0xac   : > { %4248 = vmatmul.mubr.bf16.gmra.mrb[8].mxu0 %v5343_v42  ;;  %4027 = vmatprep.mubr.bf16.mxu1 %v5424_v10  ;;  %v5496_v14 = vsel %vm1216_vm3, %v1685_v18, %v1689_v45  ;;  %v2563_v18 = vrot.slane %v5470_v24, 1 }
  0xad   : > { %4251 = vmatprep.mubr.bf16.mxu0 %v5353_v52  ;;  %4280 = vmatpush3.bf16.msra.mxu0 %v4807_v48  ;;  %v5016_v48 = vmov 0  }
  0xae   : > { %4281 = vmatprep.subr.bf16.mxu0 %v4809_v47  ;;  %v5522_v45 = vrot.slane %v5016_v48, 1  ;;  %v5528_v35 = vsel %vm2239_vm4, %v2563_v18, %v2564_v40  ;;  %v2257_v18 = vrot.slane %v5292_v39, 1  ;;  %v2258_v40 = vrot.slane %v5286_v32, 1 }
  0xaf   : > { %v2261_v32 = vrot.slane %v5305_v58, 1  ;;  %v2266_v58 = vrot.slane %v5350_v49, 1 }
  0xb1   : > { %4282 = vmatpush3.bf16.msra.mxu0 %v4809_v47  ;;  %v4816_v47 = vld [vmem:[#allocation5 + $0x1a8] sm:$0xff]  }
  0xb2   : > { %4283 = vmatprep.subr.bf16.mxu0 %v4811_v8 }
  0xb3   : > { %4028 = vmatmul.mubr.bf16.gmra.mrb[28].mxu1 %v5470_v24 }
  0xb4   : > { %4252 = vmatmul.mubr.bf16.gmra.mrb[12].mxu0 %v5499_v21  ;;  %4047 = vmatprep.mubr.bf16.mxu1 %v5016_v48 }
  0xb5   : > { %4255 = vmatprep.mubr.bf16.mxu0 %v5502_v46  ;;  %4284 = vmatpush3.bf16.msra.mxu0 %v4811_v8  ;;  %v5537_v8 = vld [vmem:[#allocation5 + $0x40] sm:$0xff]  }
  0xb6   : > { %4285 = vmatprep.subr.bf16.mxu0 %v4813_v4 }
  0xb9   : > { %4286 = vmatpush3.bf16.msra.mxu0 %v4813_v4  ;;  %v5540_v4 = vsel %vm2239_vm4, %v2242_v37, %v2243_v0  ;;  %v5572_v37 = vsel %vm2239_vm4, %v2257_v18, %v2258_v40  ;;  %v4824_v18 = vld [vmem:[#allocation5 + $0x48] sm:$0xff]   ;;  %v4826_v40 = vld [vmem:[#allocation5 + $0x50] sm:$0xff]  }
  0xba   : > { %4319 = vmatprep.subr.bf16.mxu0 %v4815_v61 }
  0xbb   : > { %4048 = vmatmul.mubr.bf16.vlgmr.msra.gmra.mrb[0].mxu1 %v5223_v31  ;;  %v2249_v31 = vrot.slane %v5237_v50, 1  ;;  %v2254_v50 = vrot.slane %v5282_v28, 1 }
  0xbc   : > { %4256 = vmatmul.mubr.bf16.gmra.mrb[16].mxu0 %v5445_v12  ;;  %4080 = vmatpush3.bf16.msra.mxu1 %v5397_v54  ;;  %v4814_v54 = vld [vmem:[#allocation5 + $0x1a0] sm:$0xff]  }
  0xbd   : > { %4051 = vmatprep.mubr.bf16.mxu1 %v5231_v38  ;;  %4259 = vmatprep.mubr.bf16.mxu0 %v5461_v16 }
  0xbe   : > { %4081 = vmatprep.subr.bf16.mxu1 %v4808_v62 }
  0xc0   : > { %4082 = vmatpush3.bf16.msra.mxu1 %v4808_v62  ;;  %v5543_v62 = vsel %vm2239_vm4, %v2245_v27, %v2246_v63  ;;  %v4825_v27 = vld [vmem:[#allocation5 + $0x168] sm:$0xff]   ;;  %v2263_v63 = vrot.slane %v5329_v13, 1 }
  0xc1   : > { %4083 = vmatprep.subr.bf16.mxu1 %v4810_v23 }
  0xc3   : > { %4052 = vmatmul.mubr.bf16.gmra.mrb[4].mxu1 %v5243_v57 }
  0xc4   : > { %4260 = vmatmul.mubr.bf16.gmra.mrb[20].mxu0 %v5473_v34  ;;  %4055 = vmatprep.mubr.bf16.mxu1 %v5263_v9 }
  0xc5   : > { %4263 = vmatprep.mubr.bf16.mxu0 %v5481_v17  ;;  %4084 = vmatpush3.bf16.msra.mxu1 %v4810_v23  ;;  %v2251_v23 = vrot.slane %v5263_v9, 1 }
  0xc6   : > { %4085 = vmatprep.subr.bf16.mxu1 %v4812_v19 }
  0xc9   : > { %4086 = vmatpush3.bf16.msra.mxu1 %v4812_v19  ;;  %v2252_v19 = vrot.slane %v5257_v3, 1  ;;  %v2255_v3 = vrot.slane %v5271_v20, 1  ;;  %v2260_v20 = vrot.slane %v5315_v2, 1 }
  0xca   : > { %4087 = vmatprep.subr.bf16.mxu1 %v4814_v54 }
  0xcb   : > { %4056 = vmatmul.mubr.bf16.gmra.mrb[8].mxu1 %v5282_v28  ;;  %v5569_v0 = vsel %vm2239_vm4, %v2254_v50, %v2255_v3  ;;  %v5596_v50 = vld [vmem:[#allocation5 + $0x200] sm:$0xff]  }
  0xcc   : > { %4264 = vmatmul.mubr.bf16.gmra.mrb[24].mxu0 %v5485_v30  ;;  %4059 = vmatprep.mubr.bf16.mxu1 %v5292_v39 }
  0xcd   : > { %4267 = vmatprep.mubr.bf16.mxu0 %v5496_v14  ;;  %4088 = vmatpush3.bf16.msra.mxu1 %v4814_v54  ;;  %v4819_v54 = vld [vmem:[#allocation5 + $0x150] sm:$0xff]  }
  0xce   : > { %4089 = vmatprep.subr.bf16.mxu1 %v4816_v47 }
  0xd1   : > { %4090 = vmatpush3.bf16.msra.mxu1 %v4816_v47  ;;  %v5555_v47 = vsel %vm2239_vm4, %v2248_v29, %v2249_v31  ;;  %v4827_v29 = vld [vmem:[#allocation5 + $0x170] sm:$0xff]   ;;  %v5583_v31 = vsel %vm2239_vm4, %v2260_v20, %v2261_v32  ;;  %v2281_v20 = vrot.slane %v5406_v56, 1  ;;  %v2282_v32 = vrot.slane %v5441_v6, 1 }
  0xd2   : > { %4091 = vmatprep.subr.bf16.mxu1 %v4818_v51  ;;  %v2285_v6 = vrot.slane %v5455_v15, 1  ;;  %v4844_v15 = vld [vmem:[#allocation5 + $0x110] sm:$0xff]  }
  0xd3   : > { %4060 = vmatmul.mubr.bf16.gmra.mrb[12].mxu1 %v5315_v2 }
  0xd4   : > { %4268 = vmatmul.mubr.bf16.gmra.mrb[28].mxu0 %v5522_v45  ;;  %4063 = vmatprep.mubr.bf16.mxu1 %v5329_v13 }
  0xd5   : > { %4287 = vmatprep.mubr.bf16.mxu0 %v5522_v45  ;;  %4092 = vmatpush3.bf16.msra.mxu1 %v4818_v51  ;;  %v5558_v51 = vsel %vm2239_vm4, %v2251_v23, %v2252_v19  ;;  %v4829_v19 = vld [vmem:[#allocation5 + $0x178] sm:$0xff]  }
  0xd6   : > { %4093 = vmatprep.subr.bf16.mxu1 %v4820_v11 }
  0xd9   : > { %4094 = vmatpush3.bf16.msra.mxu1 %v4820_v11  ;;  %v4823_v11 = vld [vmem:[#allocation5 + $0x160] sm:$0xff]  }
  0xda   : > { %4127 = vmatprep.subr.bf16.mxu1 %v5537_v8 }
  0xdb   : > { %4064 = vmatmul.mubr.bf16.gmra.mrb[16].mxu1 %v5350_v49 }
  0xdc   : > { %4288 = vmatmul.mubr.bf16.vlgmr.msra.gmra.mrb[0].mxu0 %v5540_v4  ;;  %4067 = vmatprep.mubr.bf16.mxu1 %v5368_v26 }
  0xdd   : > { %4320 = vmatpush3.bf16.msra.mxu0 %v4815_v61  ;;  %4291 = vmatprep.mubr.bf16.mxu0 %v5543_v62  ;;  %v4821_v61 = vld [vmem:[#allocation5 + $0x158] sm:$0xff]  }
  0xde   : > { %4321 = vmatprep.subr.bf16.mxu0 %v4817_v25 }
  0xe1   : > { %4322 = vmatpush3.bf16.msra.mxu0 %v4817_v25  ;;  %v2264_v25 = vrot.slane %v5319_v5, 1  ;;  %v2267_v5 = vrot.slane %v5380_v36, 1  ;;  %v2272_v36 = vrot.slane %v5374_v33, 1 }
  0xe2   : > { %4323 = vmatprep.subr.bf16.mxu0 %v4819_v54 }
  0xe3   : > { %4068 = vmatmul.mubr.bf16.gmra.mrb[20].mxu1 %v5374_v33  ;;  %v5586_v23 = vsel %vm2239_vm4, %v2263_v63, %v2264_v25  ;;  %v5599_v3 = vsel %vm2239_vm4, %v2266_v58, %v2267_v5  ;;  %v4830_v63 = vld [vmem:[#allocation5 + $0x60] sm:$0xff]   ;;  %v4836_v58 = vld [vmem:[#allocation5 + $0x78] sm:$0xff]  }
  0xe4   : > { %4292 = vmatmul.mubr.bf16.gmra.mrb[4].mxu0 %v5555_v47  ;;  %4071 = vmatprep.mubr.bf16.mxu1 %v5386_v41 }
  0xe5   : > { %4295 = vmatprep.mubr.bf16.mxu0 %v5558_v51  ;;  %4324 = vmatpush3.bf16.msra.mxu0 %v4819_v54  ;;  %v2269_v54 = vrot.slane %v5368_v26, 1 }
  0xe6   : > { %4325 = vmatprep.subr.bf16.mxu0 %v4821_v61 }
  0xe9   : > { %4326 = vmatpush3.bf16.msra.mxu0 %v4821_v61  ;;  %v2270_v61 = vrot.slane %v5415_v53, 1  ;;  %v2273_v53 = vrot.slane %v5401_v55, 1  ;;  %v2278_v55 = vrot.slane %v5390_v44, 1 }
  0xea   : > { %4327 = vmatprep.subr.bf16.mxu0 %v4823_v11 }
  0xeb   : > { %4072 = vmatmul.mubr.bf16.gmra.mrb[24].mxu1 %v5390_v44 }
  0xec   : > { %4296 = vmatmul.mubr.bf16.gmra.mrb[8].mxu0 %v5569_v0  ;;  %4075 = vmatprep.mubr.bf16.mxu1 %v5406_v56 }
  0xed   : > { %4299 = vmatprep.mubr.bf16.mxu0 %v5572_v37  ;;  %4328 = vmatpush3.bf16.msra.mxu0 %v4823_v11  ;;  %v2275_v11 = vrot.slane %v5386_v41, 1 }
  0xee   : > { %4329 = vmatprep.subr.bf16.mxu0 %v4825_v27 }
  0xf1   : > { %4330 = vmatpush3.bf16.msra.mxu0 %v4825_v27  ;;  %v2276_v27 = vrot.slane %v5420_v7, 1  ;;  %v2279_v7 = vrot.slane %v5433_v60, 1  ;;  %v2284_v60 = vrot.slane %v5424_v10, 1 }
  0xf2   : > { %4331 = vmatprep.subr.bf16.mxu0 %v4827_v29 }
  0xf3   : > { %4076 = vmatmul.mubr.bf16.gmra.mrb[28].mxu1 %v5424_v10  ;;  %v5629_v25 = vsel %vm2239_vm4, %v2278_v55, %v2279_v7 }
  0xf4   : > { %4300 = vmatmul.mubr.bf16.gmra.mrb[12].mxu0 %v5583_v31  ;;  %4095 = vmatprep.mubr.bf16.mxu1 %v5231_v38  ;;  %v5602_v38 = vsel %vm2239_vm4, %v2269_v54, %v2270_v61 }
  0xf5   : > { %4303 = vmatprep.mubr.bf16.mxu0 %v5586_v23  ;;  %4332 = vmatpush3.bf16.msra.mxu0 %v4827_v29  ;;  %v4834_v29 = vld [vmem:[#allocation5 + $0x70] sm:$0xff]  }
  0xf6   : > { %4333 = vmatprep.subr.bf16.mxu0 %v4829_v19 }
  0xf9   : > { %4334 = vmatpush3.bf16.msra.mxu0 %v4829_v19  ;;  %v5641_v19 = vsel %vm2239_vm4, %v2284_v60, %v2285_v6 }
  0xfa   : > { %4367 = vmatprep.subr.bf16.mxu0 %v5596_v50 }
  0xfb   : > { %4096 = vmatmul.mubr.bf16.vlgmr.msra.gmra.mrb[0].mxu1 %v5243_v57  ;;  %v5615_v57 = vsel %vm2239_vm4, %v2272_v36, %v2273_v53 }
  0xfc   : > { %4304 = vmatmul.mubr.bf16.gmra.mrb[16].mxu0 %v5599_v3  ;;  %4128 = vmatpush3.bf16.msra.mxu1 %v5537_v8  ;;  %v5618_v8 = vsel %vm2239_vm4, %v2275_v11, %v2276_v27 }
  0xfd   : > { %4099 = vmatprep.mubr.bf16.mxu1 %v5263_v9  ;;  %4307 = vmatprep.mubr.bf16.mxu0 %v5602_v38  ;;  %v4828_v9 = vld [vmem:[#allocation5 + $0x58] sm:$0xff]  }
  0xfe   : > { %4129 = vmatprep.subr.bf16.mxu1 %v4824_v18 }
 0x100   : > { %4130 = vmatpush3.bf16.msra.mxu1 %v4824_v18 }
 0x101   : > { %4131 = vmatprep.subr.bf16.mxu1 %v4826_v40 }
 0x103   : > { %4100 = vmatmul.mubr.bf16.gmra.mrb[4].mxu1 %v5282_v28  ;;  %v5632_v28 = vsel %vm2239_vm4, %v2281_v20, %v2282_v32 }
 0x104   : > { %4308 = vmatmul.mubr.bf16.gmra.mrb[20].mxu0 %v5615_v57  ;;  %4103 = vmatprep.mubr.bf16.mxu1 %v5292_v39  ;;  %v4832_v39 = vld [vmem:[#allocation5 + $0x68] sm:$0xff]  }
 0x105   : > { %4311 = vmatprep.mubr.bf16.mxu0 %v5618_v8  ;;  %4132 = vmatpush3.bf16.msra.mxu1 %v4826_v40 }
 0x106   : > { %4133 = vmatprep.subr.bf16.mxu1 %v4828_v9 }
 0x109   : > { %4134 = vmatpush3.bf16.msra.mxu1 %v4828_v9 }
 0x10a   : > { %4135 = vmatprep.subr.bf16.mxu1 %v4830_v63 }
 0x10b   : > { %4104 = vmatmul.mubr.bf16.gmra.mrb[8].mxu1 %v5315_v2  ;;  %v4833_v2 = vld [vmem:[#allocation5 + $0x208] sm:$0xff]  }
 0x10c   : > { %4312 = vmatmul.mubr.bf16.gmra.mrb[24].mxu0 %v5629_v25  ;;  %4107 = vmatprep.mubr.bf16.mxu1 %v5329_v13  ;;  %v4842_v13 = vld [vmem:[#allocation5 + $0x100] sm:$0xff]  }
 0x10d   : > { %4315 = vmatprep.mubr.bf16.mxu0 %v5632_v28  ;;  %4136 = vmatpush3.bf16.msra.mxu1 %v4830_v63 }
 0x10e   : > { %4137 = vmatprep.subr.bf16.mxu1 %v4832_v39 }
 0x111   : > { %4138 = vmatpush3.bf16.msra.mxu1 %v4832_v39 }
 0x112   : > { %4139 = vmatprep.subr.bf16.mxu1 %v4834_v29 }
 0x113   : > { %4108 = vmatmul.mubr.bf16.gmra.mrb[12].mxu1 %v5350_v49  ;;  %v4835_v49 = vld [vmem:[#allocation5 + $0x210] sm:$0xff]  }
 0x114   : > { %4316 = vmatmul.mubr.bf16.gmra.mrb[28].mxu0 %v5641_v19  ;;  %4111 = vmatprep.mubr.bf16.mxu1 %v5368_v26  ;;  %v4837_v26 = vld [vmem:[#allocation5 + $0x218] sm:$0xff]  }
 0x115   : > { %4335 = vmatprep.mubr.bf16.mxu0 %v5540_v4  ;;  %4140 = vmatpush3.bf16.msra.mxu1 %v4834_v29  ;;  %v4849_v4 = vld [vmem:[#allocation5 + $0x138] sm:$0xff]  }
 0x116   : > { %4141 = vmatprep.subr.bf16.mxu1 %v4836_v58 }
 0x119   : > { %4142 = vmatpush3.bf16.msra.mxu1 %v4836_v58 }
 0x11a   : > { %4415 = vmatprep.subr.bf16.mxu1 %v4842_v13 }
 0x11b   : > { %4112 = vmatmul.mubr.bf16.gmra.mrb[16].mxu1 %v5374_v33  ;;  %v4838_v33 = vld [vmem:[#allocation5 + $0x220] sm:$0xff]  }
 0x11c   : > { %4336 = vmatmul.mubr.bf16.vlgmr.msra.gmra.mrb[0].mxu0 %v5543_v62  ;;  %4115 = vmatprep.mubr.bf16.mxu1 %v5386_v41  ;;  %v4839_v41 = vld [vmem:[#allocation5 + $0x228] sm:$0xff]  }
 0x11d   : > { %4368 = vmatpush3.bf16.msra.mxu0 %v5596_v50  ;;  %4339 = vmatprep.mubr.bf16.mxu0 %v5555_v47 }
 0x11e   : > { %4369 = vmatprep.subr.bf16.mxu0 %v4833_v2 }
 0x121   : > { %4370 = vmatpush3.bf16.msra.mxu0 %v4833_v2 }
 0x122   : > { %4371 = vmatprep.subr.bf16.mxu0 %v4835_v49 }
 0x123   : > { %4116 = vmatmul.mubr.bf16.gmra.mrb[20].mxu1 %v5390_v44  ;;  %v4840_v44 = vld [vmem:[#allocation5 + $0x230] sm:$0xff]  }
 0x124   : > { %4340 = vmatmul.mubr.bf16.gmra.mrb[4].mxu0 %v5558_v51  ;;  %4119 = vmatprep.mubr.bf16.mxu1 %v5406_v56  ;;  %v4841_v56 = vld [vmem:[#allocation5 + $0x238] sm:$0xff]  }
 0x125   : > { %4343 = vmatprep.mubr.bf16.mxu0 %v5569_v0  ;;  %4372 = vmatpush3.bf16.msra.mxu0 %v4835_v49 }
 0x126   : > { %4373 = vmatprep.subr.bf16.mxu0 %v4837_v26 }
 0x129   : > { %4374 = vmatpush3.bf16.msra.mxu0 %v4837_v26 }
 0x12a   : > { %4375 = vmatprep.subr.bf16.mxu0 %v4838_v33 }
 0x12b   : > { %4120 = vmatmul.mubr.bf16.gmra.mrb[24].mxu1 %v5424_v10  ;;  %v4843_v10 = vld [vmem:[#allocation5 + $0x108] sm:$0xff]  }
 0x12c   : > { %4344 = vmatmul.mubr.bf16.gmra.mrb[8].mxu0 %v5572_v37  ;;  %4123 = vmatprep.mubr.bf16.mxu1 %v5470_v24  ;;  %v5851_v24 = vld [vmem:[#allocation14_spill] sm:$0xff] }
 0x12d   : > { %4347 = vmatprep.mubr.bf16.mxu0 %v5583_v31  ;;  %4376 = vmatpush3.bf16.msra.mxu0 %v4838_v33 }
 0x12e   : > { %4377 = vmatprep.subr.bf16.mxu0 %v4839_v41 }
 0x131   : > { %4378 = vmatpush3.bf16.msra.mxu0 %v4839_v41 }
 0x132   : > { %4379 = vmatprep.subr.bf16.mxu0 %v4840_v44 }
 0x133   : > { %4124 = vmatmul.mubr.bf16.gmra.mrb[28].mxu1 %v5016_v48  ;;  %v5852_v48 = vld [vmem:[#allocation15_spill] sm:$0xff] }
 0x134   : > { %4348 = vmatmul.mubr.bf16.gmra.mrb[12].mxu0 %v5586_v23  ;;  %4143 = vmatprep.mubr.bf16.mxu1 %v5522_v45 }
 0x135   : > { %4351 = vmatprep.mubr.bf16.mxu0 %v5599_v3  ;;  %4380 = vmatpush3.bf16.msra.mxu0 %v4840_v44 }
 0x136   : > { %4381 = vmatprep.subr.bf16.mxu0 %v4841_v56 }
 0x139   : > { %4382 = vmatpush3.bf16.msra.mxu0 %v4841_v56 }
 0x13b   : > { %4144 = vmatmul.mubr.bf16.vlgmr.msra.gmra.mrb[0].mxu1 %v5247_v59  ;;  %v4845_v59 = vld [vmem:[#allocation5 + $0x118] sm:$0xff]  }
 0x13c   : > { %4352 = vmatmul.mubr.bf16.gmra.mrb[16].mxu0 %v5602_v38  ;;  %4423 = vmatpush3.bf16.msra.mxu1 %v4842_v13 }
 0x13d   : > { %4147 = vmatprep.mubr.bf16.mxu1 %v5253_v1  ;;  %4355 = vmatprep.mubr.bf16.mxu0 %v5615_v57  ;;  %v4846_v1 = vld [vmem:[#allocation5 + $0x120] sm:$0xff]  }
 0x13e   : > { %4416 = vmatprep.subr.bf16.mxu1 %v4843_v10 }
 0x140   : > { %4424 = vmatpush3.bf16.msra.mxu1 %v4843_v10 }
 0x141   : > { %4417 = vmatprep.subr.bf16.mxu1 %v4844_v15 }
 0x143   : > { %4148 = vmatmul.mubr.bf16.gmra.mrb[4].mxu1 %v5274_v22  ;;  %v4847_v22 = vld [vmem:[#allocation5 + $0x128] sm:$0xff]  }
 0x144   : > { %4356 = vmatmul.mubr.bf16.gmra.mrb[20].mxu0 %v5618_v8  ;;  %4151 = vmatprep.mubr.bf16.mxu1 %v5296_v43  ;;  %v4848_v43 = vld [vmem:[#allocation5 + $0x130] sm:$0xff]  }
 0x145   : > { %4359 = vmatprep.mubr.bf16.mxu0 %v5629_v25  ;;  %4425 = vmatpush3.bf16.msra.mxu1 %v4844_v15 }
 0x146   : > { %4418 = vmatprep.subr.bf16.mxu1 %v4845_v59 }
 0x149   : > { %4426 = vmatpush3.bf16.msra.mxu1 %v4845_v59 }
 0x14a   : > { %4419 = vmatprep.subr.bf16.mxu1 %v4846_v1 }
 0x14b   : > { %4152 = vmatmul.mubr.bf16.gmra.mrb[8].mxu1 %v5851_v24 }
 0x14c   : > { %4360 = vmatmul.mubr.bf16.gmra.mrb[24].mxu0 %v5632_v28  ;;  %4155 = vmatprep.mubr.bf16.mxu1 %v5852_v48 }
 0x14d   : > { %4363 = vmatprep.mubr.bf16.mxu0 %v5641_v19  ;;  %4427 = vmatpush3.bf16.msra.mxu1 %v4846_v1 }
 0x14e   : > { %4420 = vmatprep.subr.bf16.mxu1 %v4847_v22 }
 0x151   : > { %4428 = vmatpush3.bf16.msra.mxu1 %v4847_v22 }
 0x152   : > { %4421 = vmatprep.subr.bf16.mxu1 %v4848_v43 }
 0x153   : > { %4156 = vmatmul.mubr.bf16.gmra.mrb[12].mxu1 %v5343_v42 }
 0x154   : > { %4364 = vmatmul.mubr.bf16.gmra.mrb[28].mxu0 %v5528_v35  ;;  %4159 = vmatprep.mubr.bf16.mxu1 %v5353_v52 }
 0x155   : > { %4383 = vmatprep.mubr.bf16.mxu0 %v5543_v62  ;;  %4429 = vmatpush3.bf16.msra.mxu1 %v4848_v43 }
 0x156   : > { %4422 = vmatprep.subr.bf16.mxu1 %v4849_v4 }
 0x159   : > { %4430 = vmatpush3.bf16.msra.mxu1 %v4849_v4 }
 0x15b   : > { %4160 = vmatmul.mubr.bf16.gmra.mrb[16].mxu1 %v5499_v21 }
 0x15c   : > { %4384 = vmatmul.mubr.bf16.vlgmr.msra.gmra.mrb[0].mxu0 %v5555_v47  ;;  %4163 = vmatprep.mubr.bf16.mxu1 %v5502_v46 }
 0x15d   : > { %4387 = vmatprep.mubr.bf16.mxu0 %v5558_v51 }
 0x163   : > { %4164 = vmatmul.mubr.bf16.gmra.mrb[20].mxu1 %v5445_v12 }
 0x164   : > { %4388 = vmatmul.mubr.bf16.gmra.mrb[4].mxu0 %v5569_v0  ;;  %4167 = vmatprep.mubr.bf16.mxu1 %v5461_v16 }
 0x165   : > { %4391 = vmatprep.mubr.bf16.mxu0 %v5572_v37 }
 0x16b   : > { %4168 = vmatmul.mubr.bf16.gmra.mrb[24].mxu1 %v5473_v34 }
 0x16c   : > { %4392 = vmatmul.mubr.bf16.gmra.mrb[8].mxu0 %v5583_v31  ;;  %4171 = vmatprep.mubr.bf16.mxu1 %v5481_v17 }
 0x16d   : > { %4395 = vmatprep.mubr.bf16.mxu0 %v5586_v23 }
 0x173   : > { %4172 = vmatmul.mubr.bf16.gmra.mrb[28].mxu1 %v5485_v30 }
 0x174   : > { %4396 = vmatmul.mubr.bf16.gmra.mrb[12].mxu0 %v5599_v3  ;;  %4207 = vmatprep.mubr.bf16.mxu1 %v5499_v21 }
 0x175   : > { %4399 = vmatprep.mubr.bf16.mxu0 %v5602_v38 }
 0x17b   : > { %4208 = vmatmul.mubr.bf16.vlgmr.msra.gmra.mrb[16].mxu1 %v5502_v46 }
 0x17c   : > { %4400 = vmatmul.mubr.bf16.gmra.mrb[16].mxu0 %v5615_v57  ;;  %4211 = vmatprep.mubr.bf16.mxu1 %v5445_v12 }
 0x17d   : > { %4403 = vmatprep.mubr.bf16.mxu0 %v5618_v8 }
 0x183   : > { %4212 = vmatmul.mubr.bf16.gmra.mrb[20].mxu1 %v5461_v16 }
 0x184   : > { %4404 = vmatmul.mubr.bf16.gmra.mrb[20].mxu0 %v5629_v25  ;;  %4215 = vmatprep.mubr.bf16.mxu1 %v5473_v34 }
 0x185   : > { %4407 = vmatprep.mubr.bf16.mxu0 %v5632_v28 }
 0x18b   : > { %4216 = vmatmul.mubr.bf16.gmra.mrb[24].mxu1 %v5481_v17 }
 0x18c   : > { %4408 = vmatmul.mubr.bf16.gmra.mrb[24].mxu0 %v5641_v19  ;;  %4219 = vmatprep.mubr.bf16.mxu1 %v5485_v30 }
 0x18d   : > { %4411 = vmatprep.mubr.bf16.mxu0 %v5528_v35 }
 0x193   : > { %4220 = vmatmul.mubr.bf16.gmra.mrb[28].mxu1 %v5496_v14 }
 0x194   : > { %4412 = vmatmul.mubr.bf16.gmra.mrb[28].mxu0 %v5522_v45 }
 0x20e   : > { %v4145_v42 = vpop.f32.mrb[0].mxu1 }
 0x20f   : > { %v1520_v52 = vpop.f32.mrb[1].mxu1 }
 0x210   : > { %v4146_v12 = vpop.f32.mrb[2].mxu1 }
 0x211   : > { %v1523_v16 = vpop.f32.mrb[3].mxu1 }
 0x216   : > { %v4149_v21 = vpop.f32.mrb[4].mxu1 }
 0x217   : > { %v1536_v34 = vpop.f32.mrb[5].mxu1 }
 0x218   : > { %v4150_v46 = vpop.f32.mrb[6].mxu1 }
 0x219   : > { %v1539_v62 = vpop.f32.mrb[7].mxu1 }
 0x21e   : > { %v4153_v47 = vpop.f32.mrb[8].mxu1 }
 0x21f   : > { %v1552_v17 = vpop.f32.mrb[9].mxu1 }
 0x220   : > { %v4154_v51 = vpop.f32.mrb[10].mxu1 }
 0x221   : > { %v1555_v0 = vpop.f32.mrb[11].mxu1 }
 0x226   : > { %v5710_v37 = vpop.f32.mrb[12].mxu1 }
 0x227   : > { %v5712_v30 = vpop.f32.mrb[13].mxu1 }
 0x228   : > { %v5714_v14 = vpop.f32.mrb[14].mxu1 }
 0x229   : > { %v5716_v45 = vpop.f32.mrb[15].mxu1 }
 0x22f   : > { %v4385_v35 = vpop.f32.mrb[0].mxu0 }
 0x230   : > { %v4431_v31 = vadd.f32 %v4385_v35, %v4145_v42  ;;  %v2924_v23 = vpop.f32.mrb[1].mxu0 }
 0x231   : > { %v4432_v5 = vadd.f32 %v2924_v23, %v1520_v52  ;;  %v4386_v54 = vpop.f32.mrb[2].mxu0 }
 0x232   : > { %v4433_v61 = vadd.f32 %v4386_v54, %v4146_v12  ;;  %v2927_v50 = vpop.f32.mrb[3].mxu0  ;;  %v3122_v11 = vmul.f32 %v4431_v31, %v4431_v31 }
 0x233   : > { %v4434_v3 = vadd.f32 %v2927_v50, %v1523_v16  ;;  %v3120_v18 = vmul.f32 %v4432_v5, %v4432_v5 }
 0x234   : > { %v3680_v38 = vpack.c.bf16 %v4433_v61, %v4431_v31  ;;  %v3123_v7 = vmul.f32 %v4433_v61, %v4433_v61 }
 0x235   : > { %v3083_v36 = vadd.f32 %v4434_v3, %v4432_v5  ;;  %v3121_v53 = vmul.f32 %v4434_v3, %v4434_v3  ;;  %v3675_v40 = vpack.c.bf16 %v4434_v3, %v4432_v5 }
 0x236   : > { %3752 = vst [vmem:[%s5720_s18 + $0x8] sm:$0xff] %v3680_v38  }
 0x237   : > { %v3084_v27 = vadd.f32 %v4431_v31, %v3083_v36  ;;  %v3152_v57 = vadd.f32 %v3121_v53, %v3120_v18  ;;  %3676 = vst [vmem:[%s5720_s18] sm:$0xff] %v3675_v40   ;;  %v4389_v8 = vpop.f32.mrb[4].mxu0 }
 0x238   : > { %v4435_v9 = vadd.f32 %v4389_v8, %v4149_v21  ;;  %v2940_v55 = vpop.f32.mrb[5].mxu0 }
 0x239   : > { %v3153_v20 = vadd.f32 %v3152_v57, %v3122_v11  ;;  %v4436_v32 = vadd.f32 %v2940_v55, %v1536_v34  ;;  %v3085_v63 = vadd.f32 %v4433_v61, %v3084_v27  ;;  %v4390_v25 = vpop.f32.mrb[6].mxu0 }
 0x23a   : > { %v4437_v28 = vadd.f32 %v4390_v25, %v4150_v46  ;;  %v2943_v39 = vpop.f32.mrb[7].mxu0  ;;  %v3126_v33 = vmul.f32 %v4435_v9, %v4435_v9 }
 0x23b   : > { %v3086_v60 = vadd.f32 %v4436_v32, %v3085_v63  ;;  %v3124_v6 = vmul.f32 %v4436_v32, %v4436_v32  ;;  %v3154_v29 = vadd.f32 %v3153_v20, %v3123_v7  ;;  %v4438_v19 = vadd.f32 %v2943_v39, %v1539_v62 }
 0x23c   : > { %v3690_v58 = vpack.c.bf16 %v4437_v28, %v4435_v9  ;;  %v3127_v59 = vmul.f32 %v4437_v28, %v4437_v28 }
 0x23d   : > { %v3155_v2 = vadd.f32 %v3154_v29, %v3124_v6  ;;  %v3087_v13 = vadd.f32 %v4438_v19, %v3086_v60  ;;  %v3125_v49 = vmul.f32 %v4438_v19, %v4438_v19  ;;  %v3685_v26 = vpack.c.bf16 %v4438_v19, %v4436_v32 }
 0x23e   : > { %3754 = vst [vmem:[%s5720_s18 + $0x18] sm:$0xff] %v3690_v58  }
 0x23f   : > { %v3088_v41 = vadd.f32 %v4435_v9, %v3087_v13  ;;  %v3156_v44 = vadd.f32 %v3155_v2, %v3125_v49  ;;  %3753 = vst [vmem:[%s5720_s18 + $0x10] sm:$0xff] %v3685_v26   ;;  %v4393_v56 = vpop.f32.mrb[8].mxu0 }
 0x240   : > { %v4439_v10 = vadd.f32 %v4393_v56, %v4153_v47  ;;  %v2956_v15 = vpop.f32.mrb[9].mxu0 }
 0x241   : > { %v3157_v1 = vadd.f32 %v3156_v44, %v3126_v33  ;;  %v4440_v24 = vadd.f32 %v2956_v15, %v1552_v17  ;;  %v3089_v48 = vadd.f32 %v4437_v28, %v3088_v41  ;;  %v4394_v22 = vpop.f32.mrb[10].mxu0 }
 0x242   : > { %v4441_v43 = vadd.f32 %v4394_v22, %v4154_v51  ;;  %v2959_v4 = vpop.f32.mrb[11].mxu0  ;;  %v3130_v47 = vmul.f32 %v4439_v10, %v4439_v10 }
 0x243   : > { %v3090_v42 = vadd.f32 %v4440_v24, %v3089_v48  ;;  %v3128_v52 = vmul.f32 %v4440_v24, %v4440_v24  ;;  %v3158_v12 = vadd.f32 %v3157_v1, %v3127_v59  ;;  %v4442_v16 = vadd.f32 %v2959_v4, %v1555_v0 }
 0x244   : > { %v3700_v21 = vpack.c.bf16 %v4441_v43, %v4439_v10  ;;  %v3131_v51 = vmul.f32 %v4441_v43, %v4441_v43 }
 0x245   : > { %v3159_v34 = vadd.f32 %v3158_v12, %v3128_v52  ;;  %v3091_v46 = vadd.f32 %v4442_v16, %v3090_v42  ;;  %v3129_v62 = vmul.f32 %v4442_v16, %v4442_v16  ;;  %v3695_v35 = vpack.c.bf16 %v4442_v16, %v4440_v24 }
 0x246   : > { %3756 = vst [vmem:[%s5720_s18 + $0x28] sm:$0xff] %v3700_v21  }
 0x247   : > { %v3092_v31 = vadd.f32 %v4439_v10, %v3091_v46  ;;  %v3160_v23 = vadd.f32 %v3159_v34, %v3129_v62  ;;  %3755 = vst [vmem:[%s5720_s18 + $0x20] sm:$0xff] %v3695_v35   ;;  %v4397_v17 = vpop.f32.mrb[12].mxu0 }
 0x248   : > { %v4443_v5 = vadd.f32 %v4397_v17, %v5710_v37  ;;  %v2972_v54 = vpop.f32.mrb[13].mxu0 }
 0x249   : > { %v3161_v61 = vadd.f32 %v3160_v23, %v3130_v47  ;;  %v4444_v50 = vadd.f32 %v2972_v54, %v5712_v30  ;;  %v3093_v0 = vadd.f32 %v4441_v43, %v3092_v31  ;;  %v4398_v3 = vpop.f32.mrb[14].mxu0 }
 0x24a   : > { %v4445_v38 = vadd.f32 %v4398_v3, %v5714_v14  ;;  %v2975_v18 = vpop.f32.mrb[15].mxu0  ;;  %v3134_v7 = vmul.f32 %v4443_v5, %v4443_v5 }
 0x24b   : > { %v3094_v36 = vadd.f32 %v4444_v50, %v3093_v0  ;;  %v3132_v53 = vmul.f32 %v4444_v50, %v4444_v50  ;;  %v3162_v40 = vadd.f32 %v3161_v61, %v3131_v51  ;;  %v4446_v11 = vadd.f32 %v2975_v18, %v5716_v45 }
 0x24c   : > { %v3710_v27 = vpack.c.bf16 %v4445_v38, %v4443_v5  ;;  %v3135_v39 = vmul.f32 %v4445_v38, %v4445_v38 }
 0x24d   : > { %v3163_v57 = vadd.f32 %v3162_v40, %v3132_v53  ;;  %v3095_v37 = vadd.f32 %v4446_v11, %v3094_v36  ;;  %v3133_v8 = vmul.f32 %v4446_v11, %v4446_v11  ;;  %v3705_v9 = vpack.c.bf16 %v4446_v11, %v4444_v50 }
 0x24e   : > { %3758 = vst [vmem:[%s5720_s18 + $0x38] sm:$0xff] %v3710_v27   ;;  %v4209_v55 = vpop.f32.mrb[16].mxu1 }
 0x24f   : > { %v3096_v30 = vadd.f32 %v4443_v5, %v3095_v37  ;;  %v3164_v20 = vadd.f32 %v3163_v57, %v3133_v8  ;;  %3757 = vst [vmem:[%s5720_s18 + $0x30] sm:$0xff] %v3705_v9   ;;  %v4401_v32 = vpop.f32.mrb[16].mxu0  ;;  %v1855_v14 = vpop.f32.mrb[17].mxu1 }
 0x250   : > { %v4447_v63 = vadd.f32 %v4401_v32, %v4209_v55  ;;  %v2988_v25 = vpop.f32.mrb[17].mxu0  ;;  %v4210_v28 = vpop.f32.mrb[18].mxu1 }
 0x251   : > { %v3165_v60 = vadd.f32 %v3164_v20, %v3134_v7  ;;  %v4448_v45 = vadd.f32 %v2988_v25, %v1855_v14  ;;  %v3097_v6 = vadd.f32 %v4445_v38, %v3096_v30  ;;  %v4402_v29 = vpop.f32.mrb[18].mxu0  ;;  %v1858_v19 = vpop.f32.mrb[19].mxu1 }
 0x252   : > { %v4449_v58 = vadd.f32 %v4402_v29, %v4210_v28  ;;  %v2991_v2 = vpop.f32.mrb[19].mxu0  ;;  %v3138_v1 = vmul.f32 %v4447_v63, %v4447_v63 }
 0x253   : > { %v3098_v13 = vadd.f32 %v4448_v45, %v3097_v6  ;;  %v3136_v49 = vmul.f32 %v4448_v45, %v4448_v45  ;;  %v3166_v26 = vadd.f32 %v3165_v60, %v3135_v39  ;;  %v4450_v33 = vadd.f32 %v2991_v2, %v1858_v19 }
 0x254   : > { %v3720_v41 = vpack.c.bf16 %v4449_v58, %v4447_v63  ;;  %v3139_v12 = vmul.f32 %v4449_v58, %v4449_v58 }
 0x255   : > { %v3167_v44 = vadd.f32 %v3166_v26, %v3136_v49  ;;  %v3099_v56 = vadd.f32 %v4450_v33, %v3098_v13  ;;  %v3137_v10 = vmul.f32 %v4450_v33, %v4450_v33  ;;  %v3715_v15 = vpack.c.bf16 %v4450_v33, %v4448_v45 }
 0x256   : > { %3760 = vst [vmem:[%s5720_s18 + $0x48] sm:$0xff] %v3720_v41   ;;  %v4213_v59 = vpop.f32.mrb[20].mxu1 }
 0x257   : > { %v3100_v24 = vadd.f32 %v4447_v63, %v3099_v56  ;;  %v3168_v48 = vadd.f32 %v3167_v44, %v3137_v10  ;;  %3759 = vst [vmem:[%s5720_s18 + $0x40] sm:$0xff] %v3715_v15   ;;  %v4405_v22 = vpop.f32.mrb[20].mxu0  ;;  %v1871_v43 = vpop.f32.mrb[21].mxu1 }
 0x258   : > { %v4451_v4 = vadd.f32 %v4405_v22, %v4213_v59  ;;  %v3004_v42 = vpop.f32.mrb[21].mxu0  ;;  %v4214_v52 = vpop.f32.mrb[22].mxu1 }
 0x259   : > { %v3169_v16 = vadd.f32 %v3168_v48, %v3138_v1  ;;  %v4452_v21 = vadd.f32 %v3004_v42, %v1871_v43  ;;  %v3101_v34 = vadd.f32 %v4449_v58, %v3100_v24  ;;  %v4406_v46 = vpop.f32.mrb[22].mxu0  ;;  %v1874_v62 = vpop.f32.mrb[23].mxu1 }
 0x25a   : > { %v4453_v35 = vadd.f32 %v4406_v46, %v4214_v52  ;;  %v3007_v47 = vpop.f32.mrb[23].mxu0  ;;  %v3142_v38 = vmul.f32 %v4451_v4, %v4451_v4 }
 0x25b   : > { %v3102_v31 = vadd.f32 %v4452_v21, %v3101_v34  ;;  %v3140_v23 = vmul.f32 %v4452_v21, %v4452_v21  ;;  %v3170_v17 = vadd.f32 %v3169_v16, %v3139_v12  ;;  %v4454_v5 = vadd.f32 %v3007_v47, %v1874_v62 }
 0x25c   : > { %v3730_v54 = vpack.c.bf16 %v4453_v35, %v4451_v4  ;;  %v3143_v37 = vmul.f32 %v4453_v35, %v4453_v35 }
 0x25d   : > { %v3171_v51 = vadd.f32 %v3170_v17, %v3140_v23  ;;  %v3103_v61 = vadd.f32 %v4454_v5, %v3102_v31  ;;  %v3141_v50 = vmul.f32 %v4454_v5, %v4454_v5  ;;  %v3725_v0 = vpack.c.bf16 %v4454_v5, %v4452_v21 }
 0x25e   : > { %3762 = vst [vmem:[%s5720_s18 + $0x58] sm:$0xff] %v3730_v54   ;;  %v4217_v3 = vpop.f32.mrb[24].mxu1 }
 0x25f   : > { %v3104_v18 = vadd.f32 %v4451_v4, %v3103_v61  ;;  %v3172_v36 = vadd.f32 %v3171_v51, %v3141_v50  ;;  %3761 = vst [vmem:[%s5720_s18 + $0x50] sm:$0xff] %v3725_v0   ;;  %v4409_v53 = vpop.f32.mrb[24].mxu0  ;;  %v1887_v40 = vpop.f32.mrb[25].mxu1 }
 0x260   : > { %v4455_v11 = vadd.f32 %v4409_v53, %v4217_v3  ;;  %v3020_v27 = vpop.f32.mrb[25].mxu0  ;;  %v4218_v57 = vpop.f32.mrb[26].mxu1 }
 0x261   : > { %v3173_v8 = vadd.f32 %v3172_v36, %v3142_v38  ;;  %v4456_v9 = vadd.f32 %v3020_v27, %v1887_v40  ;;  %v3105_v55 = vadd.f32 %v4453_v35, %v3104_v18  ;;  %v4410_v7 = vpop.f32.mrb[26].mxu0  ;;  %v1890_v30 = vpop.f32.mrb[27].mxu1 }
 0x262   : > { %v4457_v20 = vadd.f32 %v4410_v7, %v4218_v57  ;;  %v3023_v32 = vpop.f32.mrb[27].mxu0  ;;  %v3146_v58 = vmul.f32 %v4455_v11, %v4455_v11 }
 0x263   : > { %v3106_v14 = vadd.f32 %v4456_v9, %v3105_v55  ;;  %v3144_v63 = vmul.f32 %v4456_v9, %v4456_v9  ;;  %v3174_v25 = vadd.f32 %v3173_v8, %v3143_v37  ;;  %v4458_v28 = vadd.f32 %v3023_v32, %v1890_v30 }
 0x264   : > { %v3740_v39 = vpack.c.bf16 %v4457_v20, %v4455_v11  ;;  %v3147_v56 = vmul.f32 %v4457_v20, %v4457_v20 }
 0x265   : > { %v3175_v60 = vadd.f32 %v3174_v25, %v3144_v63  ;;  %v3107_v45 = vadd.f32 %v4458_v28, %v3106_v14  ;;  %v3145_v6 = vmul.f32 %v4458_v28, %v4458_v28  ;;  %v3735_v29 = vpack.c.bf16 %v4458_v28, %v4456_v9 }
 0x266   : > { %3764 = vst [vmem:[%s5720_s18 + $0x68] sm:$0xff] %v3740_v39   ;;  %v4221_v19 = vpop.f32.mrb[28].mxu1 }
 0x267   : > { %v3108_v2 = vadd.f32 %v4455_v11, %v3107_v45  ;;  %v3176_v13 = vadd.f32 %v3175_v60, %v3145_v6  ;;  %3763 = vst [vmem:[%s5720_s18 + $0x60] sm:$0xff] %v3735_v29   ;;  %v4413_v49 = vpop.f32.mrb[28].mxu0  ;;  %v1903_v26 = vpop.f32.mrb[29].mxu1 }
 0x268   : > { %v4459_v33 = vadd.f32 %v4413_v49, %v4221_v19  ;;  %v3036_v41 = vpop.f32.mrb[29].mxu0  ;;  %v4222_v44 = vpop.f32.mrb[30].mxu1 }
 0x269   : > { %v3177_v10 = vadd.f32 %v3176_v13, %v3146_v58  ;;  %v4460_v15 = vadd.f32 %v3036_v41, %v1903_v26  ;;  %v3109_v59 = vadd.f32 %v4457_v20, %v3108_v2  ;;  %v4414_v1 = vpop.f32.mrb[30].mxu0  ;;  %v1906_v24 = vpop.f32.mrb[31].mxu1 }
 0x26a   : > { %v4461_v48 = vadd.f32 %v4414_v1, %v4222_v44  ;;  %v3039_v22 = vpop.f32.mrb[31].mxu0  ;;  %v3150_v62 = vmul.f32 %v4459_v33, %v4459_v33 }
 0x26b   : > { %v3110_v43 = vadd.f32 %v4460_v15, %v3109_v59  ;;  %v3148_v4 = vmul.f32 %v4460_v15, %v4460_v15  ;;  %v3178_v42 = vadd.f32 %v3177_v10, %v3147_v56  ;;  %v4462_v52 = vadd.f32 %v3039_v22, %v1906_v24 }
 0x26c   : > { %v3750_v12 = vpack.c.bf16 %v4461_v48, %v4459_v33 }
 0x26d   : > { %v3179_v16 = vadd.f32 %v3178_v42, %v3148_v4  ;;  %v3111_v21 = vadd.f32 %v4462_v52, %v3110_v43  ;;  %v3149_v34 = vmul.f32 %v4462_v52, %v4462_v52  ;;  %v3745_v46 = vpack.c.bf16 %v4462_v52, %v4460_v15 }
 0x26e   : > { %3766 = vst [vmem:[%s5720_s18 + $0x78] sm:$0xff] %v3750_v12  }
 0x26f   : > { %v3112_v35 = vadd.f32 %v4459_v33, %v3111_v21  ;;  %v3180_v47 = vadd.f32 %v3179_v16, %v3149_v34  ;;  %3765 = vst [vmem:[%s5720_s18 + $0x70] sm:$0xff] %v3745_v46  }
 0x270   : > { %4921 = shalt.err (!%p4918_p7)
}
 0x271   : > { %s4922_s29 = scalar_lea.hbm %s5745_s25, 2048  ;;  %s4926_s7 = scalar_lea.hbm %s5827_s2, 4096 }
 0x272   : > { %p4923_p9 = scmp.ne.s32.totalorder %s5745_s25, %s4922_s29  ;;  %p4927_p5 = scmp.lt.u32.totalorder %s5745_s25, %s5827_s2 }
 0x273   : > { %p4928_p11 = scmp.lt.u32.totalorder %s4926_s7, %s4922_s29  ;;  %p4930_p4 = scmp.lt.u32.totalorder %s4922_s29, %s5745_s25 }
 0x274   : > { %p4924_p1 = pnand %p4923_p9, %p5135_p12 }
 0x275   : > { %p4929_p2 = por %p4928_p11, %p4927_p5 }
 0x276   : > { %p4925_p0 = pneg %p4924_p1 }
 0x277   : > { %p4931_p6 = por %p4930_p4, %p4929_p2 }
 0x279   : > { %p4932_p8 = pnand %p4931_p6, %p4925_p0 }
 0x27b   : > { %4935 = shalt.err (!%p4932_p8)
}
 0x27c   : > { %s5018_s18 = smov 64   ;;  %s5019_s20 = smov 4   ;;  %v3151_v31 = vmul.f32 %v4461_v48, %v4461_v48  ;;  %v3113_v23 = vadd.f32 %v4461_v48, %v3112_v35  ;;  %v3181_v17 = vadd.f32 %v3180_v47, %v3150_v62 }
 0x27d   : > { %4693 = dma.vmem_to_hbm [thread:$0]  (%p5135_p12), %s5747_s8, 2048, %s5745_s25, %s3353_s5, %s5018_s18, %s5018_s18, %s5019_s20  }
 0x27e   : > { %v3114_v5 = vrot.slane %v3113_v23, 4  ;;  %v3182_v54 = vadd.f32 %v3181_v17, %v3151_v31  ;;  %s3510_s9 = sshll.u32 %s5186_s6, 1  ;;  %s3635_s4 = sshll.u32 %s5062_s16, 5 }
 0x27f   : > { %s214_s8 = scalar_lea.vmem [#allocation8], %s3510_s9  ;;  %s5780_s27 = scalar_lea.hbm %s5828_s3, %s3635_s4 }
 0x280   : > { %v3115_v51 = vadd.f32 %v3114_v5, %v3113_v23  ;;  %v3183_v61 = vrot.slane %v3182_v54, 4  ;;  %s3387_s25 = sshll.u32 %s214_s8, 4  ;;  %s3358_s28 = scalar_lea.sflag [#allocation9], %s5186_s6  ;;  %s5782_s25 = int_to_ptr.vmem [resolvable:$true] %s3387_s25 }
 0x281   : > { %s4936_s23 = scalar_lea.vmem %s5782_s25, 32  ;;  %s5020_s16 = smov [#allocation8]  }
 0x282   : > { %v3116_v50 = vrot.slane %v3115_v51, 2  ;;  %v3184_v0 = vadd.f32 %v3183_v61, %v3182_v54  ;;  %p4937_p10 = scmp.ne.s32.totalorder %s5782_s25, %s4936_s23  ;;  %s4940_s29 = sshll.u32 %s5020_s16, 4  ;;  %s4941_s29 = int_to_ptr.vmem [resolvable:$false] %s4940_s29 }
 0x283   : > { %s4942_s30 = scalar_lea.vmem %s4941_s29, 64  ;;  %p4943_p7 = scmp.lt.s32.totalorder %s5782_s25, %s4941_s29 }
 0x284   : > { %v3117_v3 = vadd.f32 %v3116_v50, %v3115_v51  ;;  %v3185_v38 = vrot.slane %v3184_v0, 2  ;;  %p4938_p13 = pnand %p4937_p10, %p5135_p12  ;;  %p4944_p9 = scmp.lt.s32.totalorder %s4942_s30, %s4936_s23 }
 0x286   : > { %v3118_v18 = vrot.slane %v3117_v3, 1  ;;  %v3186_v36 = vadd.f32 %v3185_v38, %v3184_v0  ;;  %p4939_p3 = pneg %p4938_p13  ;;  %p4945_p1 = por %p4944_p9, %p4943_p7 }
 0x288   : > { %v3187_v53 = vrot.slane %v3186_v36, 1  ;;  %v3119_v40 = vadd.f32 %v3118_v18, %v3117_v3  ;;  %p4946_p0 = pnand %p4945_p1, %p4939_p3 }
 0x28a   : > { %v3188_v11 = vadd.f32 %v3187_v53, %v3186_v36 }
 0x28c   : > { %v3190_v27 = vsel %vm472_vm1, %v3119_v40, %v3188_v11 }
 0x28d   : > { %3191 = vst [vmem:[%s214_s8] sm:$0x3] %v3190_v27 }
 0x28e   : > { %4949 = shalt.err (!%p4946_p0)
}
 0x28f   : > { %s4950_s6 = scalar_lea.hbm %s5780_s27, 32  ;;  %s4954_s10 = scalar_lea.hbm %s5828_s3, 64 }
 0x290   : > { %p4951_p5 = scmp.ne.s32.totalorder %s5780_s27, %s4950_s6  ;;  %p4955_p4 = scmp.lt.u32.totalorder %s5780_s27, %s5828_s3 }
 0x291   : > { %p4956_p6 = scmp.lt.u32.totalorder %s4954_s10, %s4950_s6  ;;  %p4958_p10 = scmp.lt.u32.totalorder %s4950_s6, %s5780_s27 }
 0x292   : > { %p4952_p11 = pnand %p4951_p5, %p5135_p12 }
 0x293   : > { %p4957_p8 = por %p4956_p6, %p4955_p4 }
 0x294   : > { %p4953_p2 = pneg %p4952_p11 }
 0x295   : > { %p4959_p13 = por %p4958_p10, %p4957_p8 }
 0x297   : > { %p4960_p3 = pnand %p4959_p13, %p4953_p2 }
 0x299   : > { %4963 = shalt.err (!%p4960_p3)
}
 0x29a   : > { %4694 = dma.vmem_to_hbm [thread:$0]  (%p5135_p12), %s5782_s25, 32, %s5780_s27, %s3358_s28  }
 0x29b PF: > { %s3399_s20 = sand.u32 1, %s4998_s12   ;;  %p5853_p7 = scmp.ne.s32.totalorder %s5835_s19, 0 }
 0x29c   : > { %p5854_p9 = scmp.ge.s32.totalorder %s5010_s15, 2  ;;  %s3400_s9 = scalar_lea.sflag [#allocation4], %s3399_s20 }
 0x29e   : > { %p4706_p1 = pnand %p5854_p9, %p5853_p7 }
 0x2a0   : > { %4989 = dma.done.wait (!%p4706_p1), %s3400_s9, 2048  }
 0x2a1   : > { %4991 = vsyncadd (!%p4706_p1), %s3400_s9, 4294965248  ;;  %s3409_s4 = scalar_lea.sflag [#allocation9], %s3399_s20 }
 0x2a2   : > { %4993 = dma.done.wait (!%p4706_p1), %s3409_s4, 32  }
 0x2a3   : > { %4995 = vsyncadd (!%p4706_p1), %s3409_s4, 4294967264  ;;  %p21_p12 = scmp.ge.s32.totalorder %s5097_s24, 4   ;;  %s5855_s12 = smov %s5002_s13 }
 0x2a4   : > { %s5856_s13 = smov %s5006_s14  ;;  %s5857_s14 = smov %s5131_s17 }
 0x2a5   : > { %s5858_s15 = smov %s5097_s24  ;;  %23 = sbr.rel (!%p21_p12) target bundleno = 8 (0x8), region = 102 }
 0x2ac   :  { %3414 = vsyncpa [#allocation3], 1 }
 0x2ad   :  { %3416 = vsyncpa [#allocation3 + $0x1], 1 }
 0x2ae   :  { %3417 = vsyncpa [#allocation6], 1 }
 0x2af   :  { %3418 = vsyncpa [#allocation4], 1 }
 0x2b0   :  { %3420 = vsyncpa [#allocation4 + $0x1], 1 }
 0x2b1   :  { %3421 = vsyncpa [#allocation9], 1 }
 0x2b2   :  { %3423 = vsyncpa [#allocation9 + $0x1], 1 }

</bundles_post_ra>
